<compile_context>
chip_gen: v6e
topology: v6e:2x2x1
jax: 0.10.0
libtpu: 0.0.40
codegen_flags: <defaults>
</compile_context>

<pallas_src>
import functools

import numpy as np

import jax
import jax.numpy as jnp
from jax import lax
from jax.experimental import pallas as pl
from jax.experimental.pallas import tpu as pltpu


# ---------------------------------------------------------------------------
# Static geometry (input must be 1x32x32 so fc1 sees 16*6*6 features).
# ---------------------------------------------------------------------------
_IN_W = 32          # input row stride in the flattened image
_A1_W = 958         # conv1 flat accumulator width  (needs up to 32*29+29 = 957)
_M1_W = 925         # pool1 window-max width        (needs up to 64*14+2*14 = 924)
_P1_W = 225         # 15*15 pooled conv1 map, flat idx 15r+c
_A2_W = 193         # conv2 flat accumulator width  (needs up to 15*12+12 = 192)
_Y2_W = 169         # 13*13 conv2 map, flat idx 13r+c
_M2_W = 141         # pool2 window-max width        (needs up to 26*5+2*5 = 140)
_P2_W = 36          # 6*6 pooled conv2 map, flat idx 6i+j
_FLAT = 16 * _P2_W  # 576


@functools.lru_cache(maxsize=None)
def _selection_constants():
    """0/1 matrices (numpy, fp32) implementing downsample / compaction / flatten."""
    # pool1 stride-2 downsample: m1[64i+2j] -> p1[15i+j]
    s1 = np.zeros((_M1_W, _P1_W), np.float32)
    for i in range(15):
        for j in range(15):
            s1[64 * i + 2 * j, 15 * i + j] = 1.0
    # conv2 row compaction: acc2[15oh+ow] -> y2[13oh+ow]
    g2 = np.zeros((_A2_W, _Y2_W), np.float32)
    for oh in range(13):
        for ow in range(13):
            g2[15 * oh + ow, 13 * oh + ow] = 1.0
    # pool2 stride-2 downsample: m2[26i+2j] -> p2[6i+j]
    s2 = np.zeros((_M2_W, _P2_W), np.float32)
    for i in range(6):
        for j in range(6):
            s2[26 * i + 2 * j, 6 * i + j] = 1.0
    # flatten helpers: replicate each channel's 36 features into all 16 slots,
    # then a 0/1 mask keeps only slot c for channel c (sum over channels).
    s2t = np.zeros((_P2_W, _FLAT), np.float32)
    for c in range(16):
        for q in range(_P2_W):
            s2t[q, _P2_W * c + q] = 1.0
    cmask = np.zeros((16, _FLAT), np.float32)
    for c in range(16):
        cmask[c, _P2_W * c:_P2_W * (c + 1)] = 1.0
    return s1, g2, s2, s2t, cmask


# ---------------------------------------------------------------------------
# Fused forward kernel: one grid step == one sample.
# ---------------------------------------------------------------------------
def _net_kernel(x_ref, w1_ref, b1_ref, w2_ref, b2_ref,
                fc1w_ref, fc1b_ref, fc2w_ref, fc2b_ref, fc3w_ref, fc3b_ref,
                s1_ref, g2_ref, s2_ref, s2t_ref, cmask_ref,
                out_ref, p1im_s):
    f32, bf16 = jnp.float32, jnp.bfloat16

    x = x_ref[0]                                              # (1, 1024) f32

    # ----- conv1 (1->6, 3x3): 9 broadcasted MACs on the flat 32x32 image -----
    acc1 = None
    for dy in range(3):
        for dx in range(3):
            dd = 3 * dy + dx
            s = _IN_W * dy + dx
            xs = x[:, s:s + _A1_W]                            # (1, 958)
            t = w1_ref[:, dd:dd + 1] * xs                     # (6, 958)
            acc1 = t if acc1 is None else acc1 + t

    # ----- 2x2 max-pool; per-channel bias + ReLU after the max (monotone) ----
    m1 = jnp.maximum(jnp.maximum(acc1[:, 0:925], acc1[:, 1:926]),
                     jnp.maximum(acc1[:, 32:957], acc1[:, 33:958]))   # (6, 925)
    p1 = jnp.maximum(
        jnp.dot(m1.astype(bf16), s1_ref[...], preferred_element_type=f32)
        + b1_ref[...], 0.0)                                           # (6, 225)

    # ----- conv2 (6->16, 3x3): im2col scratch -> one K=54 MXU matmul ---------
    for dy in range(3):
        for dx in range(3):
            dd = 3 * dy + dx
            s = 15 * dy + dx
            p1im_s[6 * dd:6 * dd + 6, :] = p1[:, s:s + _A2_W]         # (6, 193)
    acc2 = jnp.dot(w2_ref[...], p1im_s[...].astype(bf16),
                   preferred_element_type=f32)                        # (16, 193)
    y2 = jnp.maximum(
        jnp.dot(acc2.astype(bf16), g2_ref[...], preferred_element_type=f32)
        + b2_ref[...], 0.0)                                           # (16, 169)

    # ----- 2x2 max-pool (floor: drops row/col 12) + stride-2 downsample ------
    m2 = jnp.maximum(jnp.maximum(y2[:, 0:141], y2[:, 1:142]),
                     jnp.maximum(y2[:, 13:154], y2[:, 14:155]))       # (16, 141)
    p2 = jnp.dot(m2.astype(bf16), s2_ref[...],
                 preferred_element_type=f32)                          # (16, 36)

    # ----- flatten to torch's channel-major (1, 576), no masked stores -------
    p2rep = jnp.dot(p2.astype(bf16), s2t_ref[...],
                    preferred_element_type=f32)                       # (16, 576)
    flat = jnp.sum(p2rep * cmask_ref[...], axis=0, keepdims=True)     # (1, 576)

    # ----- fc1 -> relu -> fc2 -> relu -> fc3 ((out, in) weight layout) -------
    dn = (((1,), (1,)), ((), ()))      # contract features with weights' "in" dim
    h = jnp.maximum(
        lax.dot_general(flat.astype(bf16), fc1w_ref[...], dn,
                        preferred_element_type=f32) + fc1b_ref[...], 0.0)   # (1,120)
    h = jnp.maximum(
        lax.dot_general(h.astype(bf16), fc2w_ref[...], dn,
                        preferred_element_type=f32) + fc2b_ref[...], 0.0)   # (1,84)
    out = (lax.dot_general(h.astype(bf16), fc3w_ref[...], dn,
                           preferred_element_type=f32) + fc3b_ref[...])     # (1,10)
    out_ref[0] = out.astype(out_ref.dtype)


# ---------------------------------------------------------------------------
# Wrapper: one pallas_call, batch on the grid.
# ---------------------------------------------------------------------------
def net_forward(x, p):
    B = x.shape[0]
    bf16 = jnp.bfloat16

    xf = x.reshape(B, 1, _IN_W * _IN_W).astype(jnp.float32)   # (B, 1, 1024)
    w1 = p["conv1_w"].reshape(6, 9).astype(jnp.float32)       # VPU MACs, f32
    b1 = p["conv1_b"].reshape(6, 1).astype(jnp.float32)
    # conv2 weight columns grouped as (dy, dx, ci): col = 6*(3*dy+dx) + ci
    w2 = jnp.transpose(p["conv2_w"], (0, 2, 3, 1)).reshape(16, 54).astype(bf16)
    b2 = p["conv2_b"].reshape(16, 1).astype(jnp.float32)
    fc1w = p["fc1_w"].astype(bf16); fc1b = p["fc1_b"].reshape(1, 120).astype(jnp.float32)
    fc2w = p["fc2_w"].astype(bf16); fc2b = p["fc2_b"].reshape(1, 84).astype(jnp.float32)
    fc3w = p["fc3_w"].astype(bf16); fc3b = p["fc3_b"].reshape(1, 10).astype(jnp.float32)

    s1_np, g2_np, s2_np, s2t_np, cmask_np = _selection_constants()
    s1 = jnp.asarray(s1_np, bf16)          # 0/1 is exact in bf16; halves the DMA
    g2 = jnp.asarray(g2_np, bf16)
    s2 = jnp.asarray(s2_np, bf16)
    s2t = jnp.asarray(s2t_np, bf16)
    cmask = jnp.asarray(cmask_np, jnp.float32)

    const_im2 = lambda i: (0, 0)           # weights/constants stay VMEM-resident

    flops_per_sample = 2 * (6 * 9 * _A1_W + 6 * _M1_W * _P1_W + 16 * 54 * _A2_W
                            + 16 * _A2_W * _Y2_W + 16 * _M2_W * _P2_W
                            + 16 * _P2_W * _FLAT + 120 * _FLAT + 84 * 120 + 10 * 84)
    const_bytes = ((_M1_W * _P1_W + _A2_W * _Y2_W + _M2_W * _P2_W + _P2_W * _FLAT) * 2
                   + 16 * _FLAT * 4
                   + (16 * 54 + 120 * _FLAT + 84 * 120 + 10 * 84) * 2
                   + (6 * 9 + 6 + 16 + 120 + 84 + 10) * 4)
    cost = pl.CostEstimate(flops=B * flops_per_sample, transcendentals=0,
                           bytes_accessed=const_bytes + B * (1024 + 10) * 4)

    out3 = pl.pallas_call(
        _net_kernel,
        out_shape=jax.ShapeDtypeStruct((B, 1, 10), jnp.float32),
        grid=(B,),
        in_specs=[
            pl.BlockSpec((1, 1, 1024), lambda i: (i, 0, 0)),   # per-sample input
            pl.BlockSpec((6, 9), const_im2),
            pl.BlockSpec((6, 1), const_im2),
            pl.BlockSpec((16, 54), const_im2),
            pl.BlockSpec((16, 1), const_im2),
            pl.BlockSpec((120, 576), const_im2),
            pl.BlockSpec((1, 120), const_im2),
            pl.BlockSpec((84, 120), const_im2),
            pl.BlockSpec((1, 84), const_im2),
            pl.BlockSpec((10, 84), const_im2),
            pl.BlockSpec((1, 10), const_im2),
            pl.BlockSpec((_M1_W, _P1_W), const_im2),
            pl.BlockSpec((_A2_W, _Y2_W), const_im2),
            pl.BlockSpec((_M2_W, _P2_W), const_im2),
            pl.BlockSpec((_P2_W, _FLAT), const_im2),
            pl.BlockSpec((16, _FLAT), const_im2),
        ],
        out_specs=pl.BlockSpec((1, 1, 10), lambda i: (i, 0, 0)),
        scratch_shapes=[pltpu.VMEM((54, _A2_W), jnp.float32)],  # conv2 im2col
        compiler_params=pltpu.CompilerParams(
            dimension_semantics=("parallel",)),                 # 2x on v7x (2 TCs)
        cost_estimate=cost,
    )(xf, w1, b1, w2, b2, fc1w, fc1b, fc2w, fc2b, fc3w, fc3b,
      s1, g2, s2, s2t, cmask)
    return out3.reshape(B, 10)


# ---------------------------------------------------------------------------
# Parameter init (mimics PyTorch's default U(-1/sqrt(fan_in), 1/sqrt(fan_in)))
# ---------------------------------------------------------------------------
def init_params(key):
    def uniform(k, shape, fan_in):
        bound = 1.0 / jnp.sqrt(jnp.float32(fan_in))
        return jax.random.uniform(k, shape, jnp.float32, -bound, bound)

    ks = jax.random.split(key, 10)
    return {
        "conv1_w": uniform(ks[0], (6, 1, 3, 3), 1 * 3 * 3),
        "conv1_b": uniform(ks[1], (6,), 1 * 3 * 3),
        "conv2_w": uniform(ks[2], (16, 6, 3, 3), 6 * 3 * 3),
        "conv2_b": uniform(ks[3], (16,), 6 * 3 * 3),
        "fc1_w": uniform(ks[4], (120, 576), 576),
        "fc1_b": uniform(ks[5], (120,), 576),
        "fc2_w": uniform(ks[6], (84, 120), 120),
        "fc2_b": uniform(ks[7], (84,), 120),
        "fc3_w": uniform(ks[8], (10, 84), 84),
        "fc3_b": uniform(ks[9], (10,), 84),
    }


if __name__ == "__main__":
    key = jax.random.PRNGKey(0)
    k_params, k_x = jax.random.split(key)
    params = init_params(k_params)
    # The network requires 32x32 single-channel input so fc1 sees 16*6*6 features.
    x = jax.random.normal(k_x, (2, 1, 32, 32), jnp.float32)

    out = jax.jit(net_forward)(x, params)
    out = jax.block_until_ready(out)
    assert out.shape == (2, 10) and out.dtype == jnp.float32
    assert bool(jnp.isfinite(out).all())
    print("KERNEL_OK")
</pallas_src>

<mosaic_0001>
module attributes {stable_mosaic.version = 11 : i64} {
  func.func @_net_kernel(%arg0: i32, %arg1: memref<1x1x1024xf32, #tpu.memory_space<vmem>>, %arg2: memref<6x9xf32, #tpu.memory_space<vmem>>, %arg3: memref<6x1xf32, #tpu.memory_space<vmem>>, %arg4: memref<16x54xbf16, #tpu.memory_space<vmem>>, %arg5: memref<16x1xf32, #tpu.memory_space<vmem>>, %arg6: memref<120x576xbf16, #tpu.memory_space<vmem>>, %arg7: memref<1x120xf32, #tpu.memory_space<vmem>>, %arg8: memref<84x120xbf16, #tpu.memory_space<vmem>>, %arg9: memref<1x84xf32, #tpu.memory_space<vmem>>, %arg10: memref<10x84xbf16, #tpu.memory_space<vmem>>, %arg11: memref<1x10xf32, #tpu.memory_space<vmem>>, %arg12: memref<925x225xbf16, #tpu.memory_space<vmem>>, %arg13: memref<193x169xbf16, #tpu.memory_space<vmem>>, %arg14: memref<141x36xbf16, #tpu.memory_space<vmem>>, %arg15: memref<36x576xbf16, #tpu.memory_space<vmem>>, %arg16: memref<16x576xf32, #tpu.memory_space<vmem>>, %arg17: memref<1x1x10xf32, #tpu.memory_space<vmem>>, %arg18: memref<54x193xf32, #tpu.memory_space<vmem>>) attributes {dimension_semantics = [#tpu.dimension_semantics<parallel>], iteration_bounds = array<i64: 2>, scalar_prefetch = 0 : i64, scratch_operands = 1 : i64, tpu.core_type = #tpu.core_type<tc>, window_params = [{transform_indices = @transform_0, window_bounds = array<i64: 1, 1, 1024>}, {pipeline_mode = #tpu.pipeline_mode<synchronous>, transform_indices = @transform_1, window_bounds = array<i64: 6, 9>}, {pipeline_mode = #tpu.pipeline_mode<synchronous>, transform_indices = @transform_2, window_bounds = array<i64: 6, 1>}, {pipeline_mode = #tpu.pipeline_mode<synchronous>, transform_indices = @transform_3, window_bounds = array<i64: 16, 54>}, {pipeline_mode = #tpu.pipeline_mode<synchronous>, transform_indices = @transform_4, window_bounds = array<i64: 16, 1>}, {pipeline_mode = #tpu.pipeline_mode<synchronous>, transform_indices = @transform_5, window_bounds = array<i64: 120, 576>}, {pipeline_mode = #tpu.pipeline_mode<synchronous>, transform_indices = @transform_6, window_bounds = array<i64: 1, 120>}, {pipeline_mode = #tpu.pipeline_mode<synchronous>, transform_indices = @transform_7, window_bounds = array<i64: 84, 120>}, {pipeline_mode = #tpu.pipeline_mode<synchronous>, transform_indices = @transform_8, window_bounds = array<i64: 1, 84>}, {pipeline_mode = #tpu.pipeline_mode<synchronous>, transform_indices = @transform_9, window_bounds = array<i64: 10, 84>}, {pipeline_mode = #tpu.pipeline_mode<synchronous>, transform_indices = @transform_10, window_bounds = array<i64: 1, 10>}, {pipeline_mode = #tpu.pipeline_mode<synchronous>, transform_indices = @transform_11, window_bounds = array<i64: 925, 225>}, {pipeline_mode = #tpu.pipeline_mode<synchronous>, transform_indices = @transform_12, window_bounds = array<i64: 193, 169>}, {pipeline_mode = #tpu.pipeline_mode<synchronous>, transform_indices = @transform_13, window_bounds = array<i64: 141, 36>}, {pipeline_mode = #tpu.pipeline_mode<synchronous>, transform_indices = @transform_14, window_bounds = array<i64: 36, 576>}, {pipeline_mode = #tpu.pipeline_mode<synchronous>, transform_indices = @transform_15, window_bounds = array<i64: 16, 576>}, {transform_indices = @transform_16, window_bounds = array<i64: 1, 1, 10>}]} {
    %c0 = arith.constant 0 : index
    %c0_0 = arith.constant 0 : index
    %c0_1 = arith.constant 0 : index
    %0 = vector.load %arg1[%c0, %c0_0, %c0_1] : memref<1x1x1024xf32, #tpu.memory_space<vmem>>, vector<1x1x1024xf32>
    %1 = vector.shape_cast %0 : vector<1x1x1024xf32> to vector<1x1024xf32>
    %2 = vector.extract_strided_slice %1 {offsets = [0, 0], sizes = [1, 958], strides = [1, 1]} : vector<1x1024xf32> to vector<1x958xf32>
    %c0_2 = arith.constant 0 : index
    %c0_3 = arith.constant 0 : index
    %3 = vector.load %arg2[%c0_2, %c0_3] : memref<6x9xf32, #tpu.memory_space<vmem>>, vector<6x1xf32>
    %4 = vector.broadcast %3 : vector<6x1xf32> to vector<6x958xf32>
    %5 = vector.broadcast %2 : vector<1x958xf32> to vector<6x958xf32>
    %6 = arith.mulf %4, %5 : vector<6x958xf32>
    %7 = vector.extract_strided_slice %1 {offsets = [0, 1], sizes = [1, 958], strides = [1, 1]} : vector<1x1024xf32> to vector<1x958xf32>
    %c0_4 = arith.constant 0 : index
    %c1 = arith.constant 1 : index
    %8 = vector.load %arg2[%c0_4, %c1] : memref<6x9xf32, #tpu.memory_space<vmem>>, vector<6x1xf32>
    %9 = vector.broadcast %8 : vector<6x1xf32> to vector<6x958xf32>
    %10 = vector.broadcast %7 : vector<1x958xf32> to vector<6x958xf32>
    %11 = arith.mulf %9, %10 : vector<6x958xf32>
    %12 = arith.addf %6, %11 : vector<6x958xf32>
    %13 = vector.extract_strided_slice %1 {offsets = [0, 2], sizes = [1, 958], strides = [1, 1]} : vector<1x1024xf32> to vector<1x958xf32>
    %c0_5 = arith.constant 0 : index
    %c2 = arith.constant 2 : index
    %14 = vector.load %arg2[%c0_5, %c2] : memref<6x9xf32, #tpu.memory_space<vmem>>, vector<6x1xf32>
    %15 = vector.broadcast %14 : vector<6x1xf32> to vector<6x958xf32>
    %16 = vector.broadcast %13 : vector<1x958xf32> to vector<6x958xf32>
    %17 = arith.mulf %15, %16 : vector<6x958xf32>
    %18 = arith.addf %12, %17 : vector<6x958xf32>
    %19 = vector.extract_strided_slice %1 {offsets = [0, 32], sizes = [1, 958], strides = [1, 1]} : vector<1x1024xf32> to vector<1x958xf32>
    %c0_6 = arith.constant 0 : index
    %c3 = arith.constant 3 : index
    %20 = vector.load %arg2[%c0_6, %c3] : memref<6x9xf32, #tpu.memory_space<vmem>>, vector<6x1xf32>
    %21 = vector.broadcast %20 : vector<6x1xf32> to vector<6x958xf32>
    %22 = vector.broadcast %19 : vector<1x958xf32> to vector<6x958xf32>
    %23 = arith.mulf %21, %22 : vector<6x958xf32>
    %24 = arith.addf %18, %23 : vector<6x958xf32>
    %25 = vector.extract_strided_slice %1 {offsets = [0, 33], sizes = [1, 958], strides = [1, 1]} : vector<1x1024xf32> to vector<1x958xf32>
    %c0_7 = arith.constant 0 : index
    %c4 = arith.constant 4 : index
    %26 = vector.load %arg2[%c0_7, %c4] : memref<6x9xf32, #tpu.memory_space<vmem>>, vector<6x1xf32>
    %27 = vector.broadcast %26 : vector<6x1xf32> to vector<6x958xf32>
    %28 = vector.broadcast %25 : vector<1x958xf32> to vector<6x958xf32>
    %29 = arith.mulf %27, %28 : vector<6x958xf32>
    %30 = arith.addf %24, %29 : vector<6x958xf32>
    %31 = vector.extract_strided_slice %1 {offsets = [0, 34], sizes = [1, 958], strides = [1, 1]} : vector<1x1024xf32> to vector<1x958xf32>
    %c0_8 = arith.constant 0 : index
    %c5 = arith.constant 5 : index
    %32 = vector.load %arg2[%c0_8, %c5] : memref<6x9xf32, #tpu.memory_space<vmem>>, vector<6x1xf32>
    %33 = vector.broadcast %32 : vector<6x1xf32> to vector<6x958xf32>
    %34 = vector.broadcast %31 : vector<1x958xf32> to vector<6x958xf32>
    %35 = arith.mulf %33, %34 : vector<6x958xf32>
    %36 = arith.addf %30, %35 : vector<6x958xf32>
    %37 = vector.extract_strided_slice %1 {offsets = [0, 64], sizes = [1, 958], strides = [1, 1]} : vector<1x1024xf32> to vector<1x958xf32>
    %c0_9 = arith.constant 0 : index
    %c6 = arith.constant 6 : index
    %38 = vector.load %arg2[%c0_9, %c6] : memref<6x9xf32, #tpu.memory_space<vmem>>, vector<6x1xf32>
    %39 = vector.broadcast %38 : vector<6x1xf32> to vector<6x958xf32>
    %40 = vector.broadcast %37 : vector<1x958xf32> to vector<6x958xf32>
    %41 = arith.mulf %39, %40 : vector<6x958xf32>
    %42 = arith.addf %36, %41 : vector<6x958xf32>
    %43 = vector.extract_strided_slice %1 {offsets = [0, 65], sizes = [1, 958], strides = [1, 1]} : vector<1x1024xf32> to vector<1x958xf32>
    %c0_10 = arith.constant 0 : index
    %c7 = arith.constant 7 : index
    %44 = vector.load %arg2[%c0_10, %c7] : memref<6x9xf32, #tpu.memory_space<vmem>>, vector<6x1xf32>
    %45 = vector.broadcast %44 : vector<6x1xf32> to vector<6x958xf32>
    %46 = vector.broadcast %43 : vector<1x958xf32> to vector<6x958xf32>
    %47 = arith.mulf %45, %46 : vector<6x958xf32>
    %48 = arith.addf %42, %47 : vector<6x958xf32>
    %49 = vector.extract_strided_slice %1 {offsets = [0, 66], sizes = [1, 958], strides = [1, 1]} : vector<1x1024xf32> to vector<1x958xf32>
    %c0_11 = arith.constant 0 : index
    %c8 = arith.constant 8 : index
    %50 = vector.load %arg2[%c0_11, %c8] : memref<6x9xf32, #tpu.memory_space<vmem>>, vector<6x1xf32>
    %51 = vector.broadcast %50 : vector<6x1xf32> to vector<6x958xf32>
    %52 = vector.broadcast %49 : vector<1x958xf32> to vector<6x958xf32>
    %53 = arith.mulf %51, %52 : vector<6x958xf32>
    %54 = arith.addf %48, %53 : vector<6x958xf32>
    %55 = vector.extract_strided_slice %54 {offsets = [0, 0], sizes = [6, 925], strides = [1, 1]} : vector<6x958xf32> to vector<6x925xf32>
    %56 = vector.extract_strided_slice %54 {offsets = [0, 1], sizes = [6, 925], strides = [1, 1]} : vector<6x958xf32> to vector<6x925xf32>
    %57 = arith.maximumf %55, %56 : vector<6x925xf32>
    %58 = vector.extract_strided_slice %54 {offsets = [0, 32], sizes = [6, 925], strides = [1, 1]} : vector<6x958xf32> to vector<6x925xf32>
    %59 = vector.extract_strided_slice %54 {offsets = [0, 33], sizes = [6, 925], strides = [1, 1]} : vector<6x958xf32> to vector<6x925xf32>
    %60 = arith.maximumf %58, %59 : vector<6x925xf32>
    %61 = arith.maximumf %57, %60 : vector<6x925xf32>
    %62 = arith.truncf %61 : vector<6x925xf32> to vector<6x925xbf16>
    %c0_12 = arith.constant 0 : index
    %c0_13 = arith.constant 0 : index
    %63 = vector.load %arg12[%c0_12, %c0_13] : memref<925x225xbf16, #tpu.memory_space<vmem>>, vector<925x225xbf16>
    %cst = arith.constant dense<0.000000e+00> : vector<6x225xf32>
    %64 = tpu.matmul %62, %63, %cst {dimension_numbers = #tpu.dot_dimension_numbers<[1], [0], [0], [1], [0, 0, 1, 1], [], []>} : vector<6x925xbf16>, vector<925x225xbf16>, vector<6x225xf32> -> vector<6x225xf32>
    %c0_14 = arith.constant 0 : index
    %c0_15 = arith.constant 0 : index
    %65 = vector.load %arg3[%c0_14, %c0_15] : memref<6x1xf32, #tpu.memory_space<vmem>>, vector<6x1xf32>
    %66 = vector.broadcast %65 : vector<6x1xf32> to vector<6x225xf32>
    %67 = arith.addf %64, %66 : vector<6x225xf32>
    %cst_16 = arith.constant 0.000000e+00 : f32
    %68 = vector.broadcast %cst_16 : f32 to vector<6x225xf32>
    %69 = arith.maximumf %67, %68 : vector<6x225xf32>
    %70 = vector.extract_strided_slice %69 {offsets = [0, 0], sizes = [6, 193], strides = [1, 1]} : vector<6x225xf32> to vector<6x193xf32>
    %c0_17 = arith.constant 0 : index
    %c0_18 = arith.constant 0 : index
    %71 = vector.load %arg18[%c0_17, %c0_18] : memref<54x193xf32, #tpu.memory_space<vmem>>, vector<6x193xf32>
    tpu.vector_store %arg18[%c0_17, %c0_18], %70 {strides = array<i32>} : memref<54x193xf32, #tpu.memory_space<vmem>>, vector<6x193xf32>,
    %72 = vector.extract_strided_slice %69 {offsets = [0, 1], sizes = [6, 193], strides = [1, 1]} : vector<6x225xf32> to vector<6x193xf32>
    %c6_19 = arith.constant 6 : index
    %c0_20 = arith.constant 0 : index
    %73 = vector.load %arg18[%c6_19, %c0_20] : memref<54x193xf32, #tpu.memory_space<vmem>>, vector<6x193xf32>
    tpu.vector_store %arg18[%c6_19, %c0_20], %72 {strides = array<i32>} : memref<54x193xf32, #tpu.memory_space<vmem>>, vector<6x193xf32>,
    %74 = vector.extract_strided_slice %69 {offsets = [0, 2], sizes = [6, 193], strides = [1, 1]} : vector<6x225xf32> to vector<6x193xf32>
    %c12 = arith.constant 12 : index
    %c0_21 = arith.constant 0 : index
    %75 = vector.load %arg18[%c12, %c0_21] : memref<54x193xf32, #tpu.memory_space<vmem>>, vector<6x193xf32>
    tpu.vector_store %arg18[%c12, %c0_21], %74 {strides = array<i32>} : memref<54x193xf32, #tpu.memory_space<vmem>>, vector<6x193xf32>,
    %76 = vector.extract_strided_slice %69 {offsets = [0, 15], sizes = [6, 193], strides = [1, 1]} : vector<6x225xf32> to vector<6x193xf32>
    %c18 = arith.constant 18 : index
    %c0_22 = arith.constant 0 : index
    %77 = vector.load %arg18[%c18, %c0_22] : memref<54x193xf32, #tpu.memory_space<vmem>>, vector<6x193xf32>
    tpu.vector_store %arg18[%c18, %c0_22], %76 {strides = array<i32>} : memref<54x193xf32, #tpu.memory_space<vmem>>, vector<6x193xf32>,
    %78 = vector.extract_strided_slice %69 {offsets = [0, 16], sizes = [6, 193], strides = [1, 1]} : vector<6x225xf32> to vector<6x193xf32>
    %c24 = arith.constant 24 : index
    %c0_23 = arith.constant 0 : index
    %79 = vector.load %arg18[%c24, %c0_23] : memref<54x193xf32, #tpu.memory_space<vmem>>, vector<6x193xf32>
    tpu.vector_store %arg18[%c24, %c0_23], %78 {strides = array<i32>} : memref<54x193xf32, #tpu.memory_space<vmem>>, vector<6x193xf32>,
    %80 = vector.extract_strided_slice %69 {offsets = [0, 17], sizes = [6, 193], strides = [1, 1]} : vector<6x225xf32> to vector<6x193xf32>
    %c30 = arith.constant 30 : index
    %c0_24 = arith.constant 0 : index
    %81 = vector.load %arg18[%c30, %c0_24] : memref<54x193xf32, #tpu.memory_space<vmem>>, vector<6x193xf32>
    tpu.vector_store %arg18[%c30, %c0_24], %80 {strides = array<i32>} : memref<54x193xf32, #tpu.memory_space<vmem>>, vector<6x193xf32>,
    %82 = vector.extract_strided_slice %69 {offsets = [0, 30], sizes = [6, 193], strides = [1, 1]} : vector<6x225xf32> to vector<6x193xf32>
    %c36 = arith.constant 36 : index
    %c0_25 = arith.constant 0 : index
    %83 = vector.load %arg18[%c36, %c0_25] : memref<54x193xf32, #tpu.memory_space<vmem>>, vector<6x193xf32>
    tpu.vector_store %arg18[%c36, %c0_25], %82 {strides = array<i32>} : memref<54x193xf32, #tpu.memory_space<vmem>>, vector<6x193xf32>,
    %84 = vector.extract_strided_slice %69 {offsets = [0, 31], sizes = [6, 193], strides = [1, 1]} : vector<6x225xf32> to vector<6x193xf32>
    %c42 = arith.constant 42 : index
    %c0_26 = arith.constant 0 : index
    %85 = vector.load %arg18[%c42, %c0_26] : memref<54x193xf32, #tpu.memory_space<vmem>>, vector<6x193xf32>
    tpu.vector_store %arg18[%c42, %c0_26], %84 {strides = array<i32>} : memref<54x193xf32, #tpu.memory_space<vmem>>, vector<6x193xf32>,
    %86 = vector.extract_strided_slice %69 {offsets = [0, 32], sizes = [6, 193], strides = [1, 1]} : vector<6x225xf32> to vector<6x193xf32>
    %c48 = arith.constant 48 : index
    %c0_27 = arith.constant 0 : index
    %87 = vector.load %arg18[%c48, %c0_27] : memref<54x193xf32, #tpu.memory_space<vmem>>, vector<6x193xf32>
    tpu.vector_store %arg18[%c48, %c0_27], %86 {strides = array<i32>} : memref<54x193xf32, #tpu.memory_space<vmem>>, vector<6x193xf32>,
    %c0_28 = arith.constant 0 : index
    %c0_29 = arith.constant 0 : index
    %88 = vector.load %arg4[%c0_28, %c0_29] : memref<16x54xbf16, #tpu.memory_space<vmem>>, vector<16x54xbf16>
    %c0_30 = arith.constant 0 : index
    %c0_31 = arith.constant 0 : index
    %89 = vector.load %arg18[%c0_30, %c0_31] : memref<54x193xf32, #tpu.memory_space<vmem>>, vector<54x193xf32>
    %90 = arith.truncf %89 : vector<54x193xf32> to vector<54x193xbf16>
    %cst_32 = arith.constant dense<0.000000e+00> : vector<16x193xf32>
    %91 = tpu.matmul %88, %90, %cst_32 {dimension_numbers = #tpu.dot_dimension_numbers<[1], [0], [0], [1], [0, 0, 1, 1], [], []>} : vector<16x54xbf16>, vector<54x193xbf16>, vector<16x193xf32> -> vector<16x193xf32>
    %92 = arith.truncf %91 : vector<16x193xf32> to vector<16x193xbf16>
    %c0_33 = arith.constant 0 : index
    %c0_34 = arith.constant 0 : index
    %93 = vector.load %arg13[%c0_33, %c0_34] : memref<193x169xbf16, #tpu.memory_space<vmem>>, vector<193x169xbf16>
    %cst_35 = arith.constant dense<0.000000e+00> : vector<16x169xf32>
    %94 = tpu.matmul %92, %93, %cst_35 {dimension_numbers = #tpu.dot_dimension_numbers<[1], [0], [0], [1], [0, 0, 1, 1], [], []>} : vector<16x193xbf16>, vector<193x169xbf16>, vector<16x169xf32> -> vector<16x169xf32>
    %c0_36 = arith.constant 0 : index
    %c0_37 = arith.constant 0 : index
    %95 = vector.load %arg5[%c0_36, %c0_37] : memref<16x1xf32, #tpu.memory_space<vmem>>, vector<16x1xf32>
    %96 = vector.broadcast %95 : vector<16x1xf32> to vector<16x169xf32>
    %97 = arith.addf %94, %96 : vector<16x169xf32>
    %cst_38 = arith.constant 0.000000e+00 : f32
    %98 = vector.broadcast %cst_38 : f32 to vector<16x169xf32>
    %99 = arith.maximumf %97, %98 : vector<16x169xf32>
    %100 = vector.extract_strided_slice %99 {offsets = [0, 0], sizes = [16, 141], strides = [1, 1]} : vector<16x169xf32> to vector<16x141xf32>
    %101 = vector.extract_strided_slice %99 {offsets = [0, 1], sizes = [16, 141], strides = [1, 1]} : vector<16x169xf32> to vector<16x141xf32>
    %102 = arith.maximumf %100, %101 : vector<16x141xf32>
    %103 = vector.extract_strided_slice %99 {offsets = [0, 13], sizes = [16, 141], strides = [1, 1]} : vector<16x169xf32> to vector<16x141xf32>
    %104 = vector.extract_strided_slice %99 {offsets = [0, 14], sizes = [16, 141], strides = [1, 1]} : vector<16x169xf32> to vector<16x141xf32>
    %105 = arith.maximumf %103, %104 : vector<16x141xf32>
    %106 = arith.maximumf %102, %105 : vector<16x141xf32>
    %107 = arith.truncf %106 : vector<16x141xf32> to vector<16x141xbf16>
    %c0_39 = arith.constant 0 : index
    %c0_40 = arith.constant 0 : index
    %108 = vector.load %arg14[%c0_39, %c0_40] : memref<141x36xbf16, #tpu.memory_space<vmem>>, vector<141x36xbf16>
    %cst_41 = arith.constant dense<0.000000e+00> : vector<16x36xf32>
    %109 = tpu.matmul %107, %108, %cst_41 {dimension_numbers = #tpu.dot_dimension_numbers<[1], [0], [0], [1], [0, 0, 1, 1], [], []>} : vector<16x141xbf16>, vector<141x36xbf16>, vector<16x36xf32> -> vector<16x36xf32>
    %110 = arith.truncf %109 : vector<16x36xf32> to vector<16x36xbf16>
    %c0_42 = arith.constant 0 : index
    %c0_43 = arith.constant 0 : index
    %111 = vector.load %arg15[%c0_42, %c0_43] : memref<36x576xbf16, #tpu.memory_space<vmem>>, vector<36x576xbf16>
    %cst_44 = arith.constant dense<0.000000e+00> : vector<16x576xf32>
    %112 = tpu.matmul %110, %111, %cst_44 {dimension_numbers = #tpu.dot_dimension_numbers<[1], [0], [0], [1], [0, 0, 1, 1], [], []>} : vector<16x36xbf16>, vector<36x576xbf16>, vector<16x576xf32> -> vector<16x576xf32>
    %c0_45 = arith.constant 0 : index
    %c0_46 = arith.constant 0 : index
    %113 = vector.load %arg16[%c0_45, %c0_46] : memref<16x576xf32, #tpu.memory_space<vmem>>, vector<16x576xf32>
    %114 = arith.mulf %112, %113 : vector<16x576xf32>
    %cst_47 = arith.constant dense<0.000000e+00> : vector<576xf32>
    %115 = vector.multi_reduction <add>, %114, %cst_47 [0] : vector<16x576xf32> to vector<576xf32>
    %116 = vector.shape_cast %115 : vector<576xf32> to vector<1x576xf32>
    %117 = arith.truncf %116 : vector<1x576xf32> to vector<1x576xbf16>
    %c0_48 = arith.constant 0 : index
    %c0_49 = arith.constant 0 : index
    %118 = vector.load %arg6[%c0_48, %c0_49] : memref<120x576xbf16, #tpu.memory_space<vmem>>, vector<120x576xbf16>
    %cst_50 = arith.constant dense<0.000000e+00> : vector<1x120xf32>
    %119 = tpu.matmul %117, %118, %cst_50 {dimension_numbers = #tpu.dot_dimension_numbers<[1], [1], [0], [0], [0, 0, 1, 0], [], []>} : vector<1x576xbf16>, vector<120x576xbf16>, vector<1x120xf32> -> vector<1x120xf32>
    %c0_51 = arith.constant 0 : index
    %c0_52 = arith.constant 0 : index
    %120 = vector.load %arg7[%c0_51, %c0_52] : memref<1x120xf32, #tpu.memory_space<vmem>>, vector<1x120xf32>
    %121 = arith.addf %119, %120 : vector<1x120xf32>
    %cst_53 = arith.constant 0.000000e+00 : f32
    %122 = vector.broadcast %cst_53 : f32 to vector<1x120xf32>
    %123 = arith.maximumf %121, %122 : vector<1x120xf32>
    %124 = arith.truncf %123 : vector<1x120xf32> to vector<1x120xbf16>
    %c0_54 = arith.constant 0 : index
    %c0_55 = arith.constant 0 : index
    %125 = vector.load %arg8[%c0_54, %c0_55] : memref<84x120xbf16, #tpu.memory_space<vmem>>, vector<84x120xbf16>
    %cst_56 = arith.constant dense<0.000000e+00> : vector<1x84xf32>
    %126 = tpu.matmul %124, %125, %cst_56 {dimension_numbers = #tpu.dot_dimension_numbers<[1], [1], [0], [0], [0, 0, 1, 0], [], []>} : vector<1x120xbf16>, vector<84x120xbf16>, vector<1x84xf32> -> vector<1x84xf32>
    %c0_57 = arith.constant 0 : index
    %c0_58 = arith.constant 0 : index
    %127 = vector.load %arg9[%c0_57, %c0_58] : memref<1x84xf32, #tpu.memory_space<vmem>>, vector<1x84xf32>
    %128 = arith.addf %126, %127 : vector<1x84xf32>
    %cst_59 = arith.constant 0.000000e+00 : f32
    %129 = vector.broadcast %cst_59 : f32 to vector<1x84xf32>
    %130 = arith.maximumf %128, %129 : vector<1x84xf32>
    %131 = arith.truncf %130 : vector<1x84xf32> to vector<1x84xbf16>
    %c0_60 = arith.constant 0 : index
    %c0_61 = arith.constant 0 : index
    %132 = vector.load %arg10[%c0_60, %c0_61] : memref<10x84xbf16, #tpu.memory_space<vmem>>, vector<10x84xbf16>
    %cst_62 = arith.constant dense<0.000000e+00> : vector<1x10xf32>
    %133 = tpu.matmul %131, %132, %cst_62 {dimension_numbers = #tpu.dot_dimension_numbers<[1], [1], [0], [0], [0, 0, 1, 0], [], []>} : vector<1x84xbf16>, vector<10x84xbf16>, vector<1x10xf32> -> vector<1x10xf32>
    %c0_63 = arith.constant 0 : index
    %c0_64 = arith.constant 0 : index
    %134 = vector.load %arg11[%c0_63, %c0_64] : memref<1x10xf32, #tpu.memory_space<vmem>>, vector<1x10xf32>
    %135 = arith.addf %133, %134 : vector<1x10xf32>
    %c0_65 = arith.constant 0 : index
    %c0_66 = arith.constant 0 : index
    %c0_67 = arith.constant 0 : index
    %136 = vector.load %arg17[%c0_65, %c0_66, %c0_67] : memref<1x1x10xf32, #tpu.memory_space<vmem>>, vector<1x1x10xf32>
    %137 = vector.shape_cast %136 : vector<1x1x10xf32> to vector<1x10xf32>
    %138 = vector.shape_cast %135 : vector<1x10xf32> to vector<1x1x10xf32>
    tpu.vector_store %arg17[%c0_65, %c0_66, %c0_67], %138 {strides = array<i32>} : memref<1x1x10xf32, #tpu.memory_space<vmem>>, vector<1x1x10xf32>,
    return
  }
  func.func @transform_0(%arg0: i32) -> (i32, i32, i32) {
    %c0_i32 = arith.constant 0 : i32
    %c0_i32_0 = arith.constant 0 : i32
    %c0_i32_1 = arith.constant 0 : i32
    return %arg0, %c0_i32, %c0_i32_0 : i32, i32, i32
  }
  func.func @transform_1(%arg0: i32) -> (i32, i32) {
    %c0_i32 = arith.constant 0 : i32
    %c0_i32_0 = arith.constant 0 : i32
    %c0_i32_1 = arith.constant 0 : i32
    return %c0_i32, %c0_i32_0 : i32, i32
  }
  func.func @transform_2(%arg0: i32) -> (i32, i32) {
    %c0_i32 = arith.constant 0 : i32
    %c0_i32_0 = arith.constant 0 : i32
    %c0_i32_1 = arith.constant 0 : i32
    return %c0_i32, %c0_i32_0 : i32, i32
  }
  func.func @transform_3(%arg0: i32) -> (i32, i32) {
    %c0_i32 = arith.constant 0 : i32
    %c0_i32_0 = arith.constant 0 : i32
    %c0_i32_1 = arith.constant 0 : i32
    return %c0_i32, %c0_i32_0 : i32, i32
  }
  func.func @transform_4(%arg0: i32) -> (i32, i32) {
    %c0_i32 = arith.constant 0 : i32
    %c0_i32_0 = arith.constant 0 : i32
    %c0_i32_1 = arith.constant 0 : i32
    return %c0_i32, %c0_i32_0 : i32, i32
  }
  func.func @transform_5(%arg0: i32) -> (i32, i32) {
    %c0_i32 = arith.constant 0 : i32
    %c0_i32_0 = arith.constant 0 : i32
    %c0_i32_1 = arith.constant 0 : i32
    return %c0_i32, %c0_i32_0 : i32, i32
  }
  func.func @transform_6(%arg0: i32) -> (i32, i32) {
    %c0_i32 = arith.constant 0 : i32
    %c0_i32_0 = arith.constant 0 : i32
    %c0_i32_1 = arith.constant 0 : i32
    return %c0_i32, %c0_i32_0 : i32, i32
  }
  func.func @transform_7(%arg0: i32) -> (i32, i32) {
    %c0_i32 = arith.constant 0 : i32
    %c0_i32_0 = arith.constant 0 : i32
    %c0_i32_1 = arith.constant 0 : i32
    return %c0_i32, %c0_i32_0 : i32, i32
  }
  func.func @transform_8(%arg0: i32) -> (i32, i32) {
    %c0_i32 = arith.constant 0 : i32
    %c0_i32_0 = arith.constant 0 : i32
    %c0_i32_1 = arith.constant 0 : i32
    return %c0_i32, %c0_i32_0 : i32, i32
  }
  func.func @transform_9(%arg0: i32) -> (i32, i32) {
    %c0_i32 = arith.constant 0 : i32
    %c0_i32_0 = arith.constant 0 : i32
    %c0_i32_1 = arith.constant 0 : i32
    return %c0_i32, %c0_i32_0 : i32, i32
  }
  func.func @transform_10(%arg0: i32) -> (i32, i32) {
    %c0_i32 = arith.constant 0 : i32
    %c0_i32_0 = arith.constant 0 : i32
    %c0_i32_1 = arith.constant 0 : i32
    return %c0_i32, %c0_i32_0 : i32, i32
  }
  func.func @transform_11(%arg0: i32) -> (i32, i32) {
    %c0_i32 = arith.constant 0 : i32
    %c0_i32_0 = arith.constant 0 : i32
    %c0_i32_1 = arith.constant 0 : i32
    return %c0_i32, %c0_i32_0 : i32, i32
  }
  func.func @transform_12(%arg0: i32) -> (i32, i32) {
    %c0_i32 = arith.constant 0 : i32
    %c0_i32_0 = arith.constant 0 : i32
    %c0_i32_1 = arith.constant 0 : i32
    return %c0_i32, %c0_i32_0 : i32, i32
  }
  func.func @transform_13(%arg0: i32) -> (i32, i32) {
    %c0_i32 = arith.constant 0 : i32
    %c0_i32_0 = arith.constant 0 : i32
    %c0_i32_1 = arith.constant 0 : i32
    return %c0_i32, %c0_i32_0 : i32, i32
  }
  func.func @transform_14(%arg0: i32) -> (i32, i32) {
    %c0_i32 = arith.constant 0 : i32
    %c0_i32_0 = arith.constant 0 : i32
    %c0_i32_1 = arith.constant 0 : i32
    return %c0_i32, %c0_i32_0 : i32, i32
  }
  func.func @transform_15(%arg0: i32) -> (i32, i32) {
    %c0_i32 = arith.constant 0 : i32
    %c0_i32_0 = arith.constant 0 : i32
    %c0_i32_1 = arith.constant 0 : i32
    return %c0_i32, %c0_i32_0 : i32, i32
  }
  func.func @transform_16(%arg0: i32) -> (i32, i32, i32) {
    %c0_i32 = arith.constant 0 : i32
    %c0_i32_0 = arith.constant 0 : i32
    %c0_i32_1 = arith.constant 0 : i32
    return %arg0, %c0_i32, %c0_i32_0 : i32, i32, i32
  }
}

</mosaic_0001>

<bundles_post_ra>
// kernel: net_forward.1
= control target key start
LH: loop header
LB: loop body
LE: loop exit
PB: predicated region body
PF: predicated region fallthrough
CT: control target
= control target key end

     0   :  { %s5797_s0 = inlined_call_operand.vmem [shape: f32[2,1,1024], index: 0, kind: input, shape index: {}]   ;;  %s5798_s1 = inlined_call_operand.vmem [shape: f32[6,9], index: 1, kind: input, shape index: {}]   ;;  %s5799_s2 = inlined_call_operand.vmem [shape: f32[6,1], index: 2, kind: input, shape index: {}]   ;;  %s5800_s3 = inlined_call_operand.vmem [shape: bf16[16,54], index: 3, kind: input, shape index: {}]   ;;  %s5801_s4 = inlined_call_operand.vmem [shape: f32[16,1], index: 4, kind: input, shape index: {}]   ;;  %s5802_s5 = inlined_call_operand.vmem [shape: bf16[120,576], index: 5, kind: input, shape index: {}]   ;;  %s5803_s6 = inlined_call_operand.vmem [shape: f32[1,120], index: 6, kind: input, shape index: {}]   ;;  %s5804_s7 = inlined_call_operand.vmem [shape: bf16[84,120], index: 7, kind: input, shape index: {}]   ;;  %s5805_s8 = inlined_call_operand.vmem [shape: f32[1,84], index: 8, kind: input, shape index: {}]   ;;  %s5806_s9 = inlined_call_operand.vmem [shape: bf16[10,84], index: 9, kind: input, shape index: {}]   ;;  %s5807_s10 = inlined_call_operand.vmem [shape: f32[1,10], index: 10, kind: input, shape index: {}]   ;;  %s5808_s11 = inlined_call_operand.vmem [shape: bf16[925,225], index: 11, kind: input, shape index: {}]   ;;  %s5809_s12 = inlined_call_operand.vmem [shape: bf16[193,169], index: 12, kind: input, shape index: {}]   ;;  %s5810_s13 = inlined_call_operand.vmem [shape: bf16[141,36], index: 13, kind: input, shape index: {}]   ;;  %s5811_s14 = inlined_call_operand.vmem [shape: bf16[36,576], index: 14, kind: input, shape index: {}]   ;;  %s5812_s15 = inlined_call_operand.vmem [shape: f32[16,576], index: 15, kind: input, shape index: {}]   ;;  %s5813_s16 = inlined_call_operand.hbm [shape: f32[2,1,10], index: 16, kind: output, shape index: {}]  }
   0x1   :  { %5833 = sst [smem:[#allocation12_spill]] %s5797_s0 }
   0x2   :  { %5834 = sst [smem:[#allocation13_spill]] %s5798_s1 }
   0x3   :  { %21 = vsyncpa [#allocation4], 0 }
   0x4   :  { %23 = vsyncpa [#allocation4 + $0x1], 0  ;;  %s4430_s21 = smov 0   ;;  %s4432_s22 = smov 0  }
   0x5   :  { %s4434_s23 = smov 0   ;;  %s4436_s24 = smov 0  }
   0x6 LB: > { %5835 = sst [smem:[#allocation6_spill]] %s4304_s21  ;;  %s4451_s25 = sadd.s32 4294967295, %s4316_s24   ;;  %s4316_s24 = sphi %s4436_s24, %s5856_s24   ;;  %s4312_s23 = sphi %s4434_s23, %s5858_s23   ;;  %s4308_s22 = sphi %s4432_s22, %s5860_s22   ;;  %s4304_s21 = sphi %s4430_s21, %s5859_s21  }
   0x7   : > { %5836 = sst [smem:[#allocation7_spill]] %s4312_s23  ;;  %s3515_s26 = sadd.s32 4294967294, %s4316_s24  }
   0x8   : > { %5837 = sst [smem:[#allocation8_spill]] %s4316_s24  ;;  %s4455_s27 = sadd.s32 1, %s4316_s24  }
   0x9   : > { %5838 = sst [smem:[#allocation9_spill]] %s4455_s27  ;;  %s377_s28 = sadd.s32 1, %s4312_s23 }
   0xa   : > { %s374_s29 = ssub.s32 %s4316_s24, %s4455_s27  ;;  %p387_p0 = scmp.ne.s32.totalorder %s4312_s23, %s4308_s22 }
   0xb   : > { %p375_p1 = scmp.eq.s32.totalorder %s374_s29, 0  ;;  %p388_p2 = scmp.eq.s32.totalorder %s4451_s25, 1 }
   0xc   : > { %p393_p3 = scmp.ne.s32.totalorder %s4308_s22, %s4304_s21  ;;  %p394_p4 = scmp.eq.s32.totalorder %s3515_s26, 1 }
   0xd   : > { %s4466_s30 = scalar_select %p375_p1, %s4312_s23, %s377_s28  }
   0xe   : > { %p4468_p5 = por %p388_p2, %p387_p0  ;;  %p4472_p6 = por %p394_p4, %p393_p3 }
   0xf   : > { %5839 = sst [smem:[#allocation10_spill]] %s4466_s30  ;;  %p3518_p7 = scmp.ge.s32.totalorder %s4316_s24, 1 }
  0x10   : > { %s5841_s17 = scalar_select %p4472_p6, 1, 0 }
  0x11   : > { %p464_p8 = scmp.lt.s32.totalorder %s4316_s24, 3 }
  0x12   : > { %5842 = sst [smem:[#allocation11_spill]] %s5841_s17 }
  0x13   : > { %p465_p9 = pnand %p3518_p7, %p464_p8 }
  0x14   : > { %s5843_s1 = sld [smem:[#allocation13_spill]] (!%p465_p9)  ;;  %p512_p10 = scmp.lt.s32.totalorder (!%p465_p9), %s4451_s25, 1 }
  0x15   : > { %468 = sbr.rel (%p465_p9) target bundleno = 2823 (0xb07), region = 84  ;;  %s5844_s18 = sld [smem:[#allocation12_spill]] (!%p465_p9) }
  0x16   : > { %s5824_s28 = smov (!%p465_p9), 96   ;;  %s5822_s29 = smov (!%p465_p9), 95  }
  0x17   : > { %s4336_s23 = smov (!%p465_p9), 112   ;;  %s4338_s24 = smov (!%p465_p9), 98  }
  0x18   : > { %s4339_s27 = smov (!%p465_p9), 97   ;;  %s3747_s21 = sshll.u32 (!%p465_p9), %s4451_s25, 4 }
  0x1a   : > { %v518_v0 = vld [vmem:[%s5843_s1] sm:$0x3f]  ;;  %v4318_v1 = vmov 1   ;;  %v4319_v2 = vmov 3   ;;  %v525_v3 = vlaneseq  ;;  %s513_s20 = scalar_select %p512_p10, %s4451_s25, 1  ;;  %v4320_v5 = vmov 2  }
  0x1b   : > { %3889 = vset.pattern.permute.xlu0 %v4318_v1  ;;  %3891 = vset.pattern.permute.xlu1 %v4319_v2  ;;  %v4321_v6 = vmov 4   ;;  %v4322_v14 = vmov 5   ;;  %v4323_v15 = vmov 6   ;;  %v4324_v16 = vmov 7   ;;  %s5852_s1 = smov 96  }
  0x1c   : > { %574 = vperm.xlu0 %3889, %v518_v0   ;;  %694 = vperm.xlu1 %3891, %v518_v0   ;;  %v526_v4 = vshrl.u32 %v525_v3, 7  ;;  %s3519_s26 = sshll.u32 %s513_s20, 3  ;;  %v4325_v17 = vmov 0   ;;  %v4326_v18 = vmov 8   ;;  %s5818_s20 = smov 127   ;;  %vm609_vm0 = vcmask 1039360  }
  0x1d   : > { %s515_s19 = scalar_lea.vmem %s5844_s18, %s3519_s26  ;;  %s5820_s26 = smov 126   ;;  %vm669_vm1 = vcmask 1031168   ;;  %vm729_vm2 = vcmask 785408   ;;  %vm789_vm3 = vcmask 777216   ;;  %vm849_vm4 = vcmask 769024  }
  0x1e   : > { %v517_v7 = vld [vmem:[%s515_s19] sm:$0xff]  ;;  %v547_v8 = vsub.s32 5, %v526_v4  ;;  %v551_v9 = vsub.s32 6, %v526_v4  ;;  %v555_v10 = vsub.s32 7, %v526_v4  ;;  %v539_v19 = vsub.s32 3, %v526_v4  ;;  %s5814_s18 = smov 94  }
  0x1f   : > { %v531_v20 = vsub.s32 1, %v526_v4  ;;  %v535_v23 = vsub.s32 2, %v526_v4  ;;  %v527_v24 = vsub.s32 0, %v526_v4  ;;  %v543_v26 = vsub.s32 4, %v526_v4  ;;  %s5816_s19 = smov 64  }
  0x20   : > { %3890 = vset.pattern.permute.xlu0 %v4320_v5  ;;  %3892 = vset.pattern.permute.xlu1 %v4321_v6  ;;  %v4486_v11 = vrot.slane %v517_v7, %v547_v8  ;;  %v4488_v12 = vrot.slane %v517_v7, %v551_v9  ;;  %v4490_v13 = vrot.slane %v517_v7, %v555_v10  ;;  %vm909_vm5 = vcmask 523264  }
  0x21   : > { %634 = vperm.xlu0 %3890, %v518_v0   ;;  %754 = vperm.xlu1 %3892, %v518_v0   ;;  %v4494_v21 = vrot.slane %v517_v7, %v539_v19  ;;  %v4496_v22 = vrot.slane %v517_v7, %v531_v20  ;;  %v4504_v29 = vrot.slane %v517_v7, %v535_v23  ;;  %vm969_vm6 = vcmask 515072  }
  0x22   : > { %v4506_v30 = vrot.slane %v517_v7, %v527_v24  ;;  %v4516_v34 = vrot.slane %v517_v7, %v543_v26  ;;  %vm1029_vm7 = vcmask 506880   ;;  %vm1859_vm8 = vcmask 1045504  }
  0x23   : > { %vm1860_vm9 = vcmask 1046528   ;;  %vm1855_vm10 = vcmask 236544   ;;  %vm2036_vm11 = vcmask 529408   ;;  %vm2087_vm12 = vcmask 916480  }
  0x24   : > { %vm2050_vm13 = vcmask 531462   ;;  %vm2053_vm14 = vcmask 527360   ;;  %vm2097_vm15 = vcmask 908288  }
  0x25   : > { %3893 = vset.pattern.permute.xlu1 %v4322_v14  ;;  %3894 = vset.pattern.permute.xlu0 %v4323_v15 }
  0x26   : > { %814 = vperm.xlu1 %3893, %v518_v0   ;;  %874 = vperm.xlu0 %3894, %v518_v0  }
  0x2a   : > { %3895 = vset.pattern.permute.xlu1 %v4324_v16  ;;  %3897 = vset.pattern.permute.xlu0 %v4325_v17 }
  0x2b   : > { %934 = vperm.xlu1 %3895, %v518_v0   ;;  %521 = vperm.xlu0 %3897, %v518_v0  }
  0x2f   : > { %3896 = vset.pattern.permute.xlu1 %v4326_v18 }
  0x30   : > { %994 = vperm.xlu1 %3896, %v518_v0  }
  0x34   : > { %3933 = vset.pattern.permute.xlu1 %v4325_v17 }
  0x97   : > { %v4498_v25 = vpop.permute.xlu0 %574  ;;  %v4530_v39 = vpop.permute.xlu1 %694 }
  0x98   : > { %v580_v27 = vmul.f32 %v4498_v25, %v4494_v21  ;;  %v578_v28 = vmul.f32 %v4498_v25, %v4496_v22  ;;  %v579_v31 = vmul.f32 %v4498_v25, %v4504_v29  ;;  %v577_v32 = vmul.f32 %v4498_v25, %v4506_v30 }
  0x99   : > { %v581_v36 = vmul.f32 %v4498_v25, %v4516_v34  ;;  %v698_v41 = vmul.f32 %v4530_v39, %v4496_v22  ;;  %v700_v44 = vmul.f32 %v4530_v39, %v4494_v21  ;;  %v699_v46 = vmul.f32 %v4530_v39, %v4504_v29 }
  0x9a   : > { %599 = vrot.lane.b32.xlu0 %v580_v27, %s5818_s20  ;;  %595 = vrot.lane.b32.xlu1 %v578_v28, %s5818_s20  ;;  %v697_v47 = vmul.f32 %v4530_v39, %v4506_v30  ;;  %v701_v50 = vmul.f32 %v4530_v39, %v4516_v34  ;;  %v582_v16 = vmul.f32 %v4498_v25, %v4486_v11 }
  0x9b   : > { %v583_v20 = vmul.f32 %v4498_v25, %v4488_v12  ;;  %v702_v23 = vmul.f32 %v4530_v39, %v4486_v11  ;;  %v703_v27 = vmul.f32 %v4530_v39, %v4488_v12 }
  0x9c   : > { %v4514_v33 = vpop.permute.xlu0 %634  ;;  %v4556_v48 = vpop.permute.xlu1 %754 }
  0x9d   : > { %v639_v35 = vmul.f32 %v4514_v33, %v4504_v29  ;;  %v638_v37 = vmul.f32 %v4514_v33, %v4496_v22  ;;  %v641_v38 = vmul.f32 %v4514_v33, %v4516_v34  ;;  %v640_v43 = vmul.f32 %v4514_v33, %v4494_v21 }
  0x9e   : > { %597 = vrot.lane.b32.xlu1 %v579_v31, %s5818_s20  ;;  %593 = vrot.lane.b32.xlu0 %v577_v32, %s5818_s20  ;;  %v637_v45 = vmul.f32 %v4514_v33, %v4506_v30  ;;  %v759_v49 = vmul.f32 %v4556_v48, %v4504_v29  ;;  %v758_v51 = vmul.f32 %v4556_v48, %v4496_v22 }
  0x9f   : > { %v761_v52 = vmul.f32 %v4556_v48, %v4516_v34  ;;  %v760_v55 = vmul.f32 %v4556_v48, %v4494_v21  ;;  %v757_v57 = vmul.f32 %v4556_v48, %v4506_v30  ;;  %v642_v19 = vmul.f32 %v4514_v33, %v4486_v11 }
  0xa0   : > { %v643_v24 = vmul.f32 %v4514_v33, %v4488_v12  ;;  %v762_v26 = vmul.f32 %v4556_v48, %v4486_v11  ;;  %v763_v31 = vmul.f32 %v4556_v48, %v4488_v12 }
  0xa1   : > { %v4532_v40 = vpop.permute.xlu0 %874  ;;  %v4570_v53 = vpop.permute.xlu1 %814 }
  0xa2   : > { %601 = vrot.lane.b32.xlu1 %v581_v36, %s5818_s20  ;;  %657 = vrot.lane.b32.xlu0 %v639_v35, %s5820_s26  ;;  %v4540_v42 = vmul.f32 %v4532_v40, %v4490_v13  ;;  %v818_v54 = vmul.f32 %v4570_v53, %v4496_v22  ;;  %v820_v56 = vmul.f32 %v4570_v53, %v4494_v21 }
  0xa3   : > { %v819_v58 = vmul.f32 %v4570_v53, %v4504_v29  ;;  %v817_v59 = vmul.f32 %v4570_v53, %v4506_v30  ;;  %v879_v60 = vmul.f32 %v4532_v40, %v4504_v29  ;;  %v821_v61 = vmul.f32 %v4570_v53, %v4516_v34 }
  0xa4   : > { %v878_v62 = vmul.f32 %v4532_v40, %v4496_v22  ;;  %v881_v63 = vmul.f32 %v4532_v40, %v4516_v34  ;;  %v880_v2 = vmul.f32 %v4532_v40, %v4494_v21  ;;  %v877_v4 = vmul.f32 %v4532_v40, %v4506_v30 }
  0xa5   : > { %v822_v28 = vmul.f32 %v4570_v53, %v4486_v11  ;;  %v882_v32 = vmul.f32 %v4532_v40, %v4486_v11  ;;  %v823_v35 = vmul.f32 %v4570_v53, %v4488_v12 }
  0xa6   : > { %655 = vrot.lane.b32.xlu1 %v638_v37, %s5820_s26  ;;  %661 = vrot.lane.b32.xlu0 %v641_v38, %s5820_s26  ;;  %v4602_v0 = vpop.permute.xlu1 %934  ;;  %v883_v37 = vmul.f32 %v4532_v40, %v4488_v12 }
  0xa7   : > { %v938_v1 = vmul.f32 %v4602_v0, %v4496_v22  ;;  %v940_v3 = vmul.f32 %v4602_v0, %v4494_v21  ;;  %v939_v5 = vmul.f32 %v4602_v0, %v4504_v29  ;;  %v937_v6 = vmul.f32 %v4602_v0, %v4506_v30 }
  0xa8   : > { %v941_v9 = vmul.f32 %v4602_v0, %v4516_v34  ;;  %v942_v36 = vmul.f32 %v4602_v0, %v4486_v11 }
  0xaa   : > { %659 = vrot.lane.b32.xlu1 %v640_v43, %s5820_s26  ;;  %715 = vrot.lane.b32.xlu0 %v698_v41, %s5824_s28  ;;  %v943_v41 = vmul.f32 %v4602_v0, %v4488_v12  ;;  %v584_v43 = vmul.f32 %v4498_v25, %v4490_v13  ;;  %v644_v25 = vmul.f32 %v4514_v33, %v4490_v13 }
  0xab   : > { %v4622_v7 = vpop.permute.xlu1 %994 }
  0xac   : > { %v999_v8 = vmul.f32 %v4622_v7, %v4504_v29  ;;  %v998_v10 = vmul.f32 %v4622_v7, %v4496_v22  ;;  %v1001_v14 = vmul.f32 %v4622_v7, %v4516_v34  ;;  %v1000_v15 = vmul.f32 %v4622_v7, %v4494_v21 }
  0xad   : > { %v997_v18 = vmul.f32 %v4622_v7, %v4506_v30  ;;  %v1002_v38 = vmul.f32 %v4622_v7, %v4486_v11  ;;  %v1003_v40 = vmul.f32 %v4622_v7, %v4488_v12 }
  0xae   : > { %653 = vrot.lane.b32.xlu1 %v637_v45, %s5820_s26  ;;  %719 = vrot.lane.b32.xlu0 %v700_v44, %s5824_s28  ;;  %v4692_v44 = vpop.permute.xlu0 %521  ;;  %v704_v45 = vmul.f32 %v4530_v39, %v4490_v13 }
  0xaf   : > { %v565_v39 = vmul.f32 %v4506_v30, %v4692_v44 }
  0xb2   : > { %717 = vrot.lane.b32.xlu1 %v699_v46, %s5824_s28  ;;  %713 = vrot.lane.b32.xlu0 %v697_v47, %s5824_s28 }
  0xb6   : > { %721 = vrot.lane.b32.xlu1 %v701_v50, %s5824_s28  ;;  %777 = vrot.lane.b32.xlu0 %v759_v49, %s5822_s29  ;;  %v824_v49 = vmul.f32 %v4570_v53, %v4490_v13 }
  0xba   : > { %775 = vrot.lane.b32.xlu1 %v758_v51, %s5822_s29  ;;  %781 = vrot.lane.b32.xlu0 %v761_v52, %s5822_s29  ;;  %v764_v52 = vmul.f32 %v4556_v48, %v4490_v13 }
  0xbe   : > { %779 = vrot.lane.b32.xlu1 %v760_v55, %s5822_s29  ;;  %835 = vrot.lane.b32.xlu0 %v818_v54, %s5814_s18  ;;  %v944_v54 = vmul.f32 %v4602_v0, %v4490_v13 }
  0xc2   : > { %773 = vrot.lane.b32.xlu1 %v757_v57, %s5822_s29  ;;  %839 = vrot.lane.b32.xlu0 %v820_v56, %s5814_s18 }
  0xc6   : > { %837 = vrot.lane.b32.xlu1 %v819_v58, %s5814_s18  ;;  %833 = vrot.lane.b32.xlu0 %v817_v59, %s5814_s18 }
  0xca   : > { %841 = vrot.lane.b32.xlu1 %v821_v61, %s5814_s18  ;;  %897 = vrot.lane.b32.xlu0 %v879_v60, %s5816_s19  ;;  %s5823_s18 = smov 63  }
  0xce   : > { %895 = vrot.lane.b32.xlu1 %v878_v62, %s5816_s19  ;;  %901 = vrot.lane.b32.xlu0 %v881_v63, %s5816_s19 }
  0xd2   : > { %899 = vrot.lane.b32.xlu1 %v880_v2, %s5816_s19  ;;  %955 = vrot.lane.b32.xlu0 %v938_v1, %s5823_s18 }
  0xd6   : > { %893 = vrot.lane.b32.xlu1 %v877_v4, %s5816_s19  ;;  %959 = vrot.lane.b32.xlu0 %v940_v3, %s5823_s18  ;;  %s5826_s19 = smov 62  }
  0xda   : > { %957 = vrot.lane.b32.xlu1 %v939_v5, %s5823_s18  ;;  %953 = vrot.lane.b32.xlu0 %v937_v6, %s5823_s18 }
  0xde   : > { %961 = vrot.lane.b32.xlu1 %v941_v9, %s5823_s18  ;;  %1017 = vrot.lane.b32.xlu0 %v999_v8, %s5826_s19 }
  0xe2   : > { %1015 = vrot.lane.b32.xlu1 %v998_v10, %s5826_s19  ;;  %1021 = vrot.lane.b32.xlu0 %v1001_v14, %s5826_s19 }
  0xe6   : > { %1019 = vrot.lane.b32.xlu1 %v1000_v15, %s5826_s19  ;;  %603 = vrot.lane.b32.xlu0 %v582_v16, %s5818_s20 }
  0xea   : > { %1013 = vrot.lane.b32.xlu1 %v997_v18, %s5826_s19  ;;  %663 = vrot.lane.b32.xlu0 %v642_v19, %s5820_s26  ;;  %v567_v19 = vmul.f32 %v4504_v29, %v4692_v44  ;;  %v568_v29 = vmul.f32 %v4494_v21, %v4692_v44 }
  0xee   : > { %605 = vrot.lane.b32.xlu1 %v583_v20, %s5818_s20  ;;  %723 = vrot.lane.b32.xlu0 %v702_v23, %s5824_s28  ;;  %s5845_s20 = smov 94   ;;  %v566_v20 = vmul.f32 %v4496_v22, %v4692_v44 }
  0xf2   : > { %665 = vrot.lane.b32.xlu1 %v643_v24, %s5820_s26  ;;  %783 = vrot.lane.b32.xlu0 %v762_v26, %s5822_s29  ;;  %s5846_s26 = smov 64  }
  0xf6   : > { %725 = vrot.lane.b32.xlu1 %v703_v27, %s5824_s28  ;;  %843 = vrot.lane.b32.xlu0 %v822_v28, %s5845_s20 }
  0xfa   : > { %785 = vrot.lane.b32.xlu1 %v763_v31, %s5822_s29  ;;  %903 = vrot.lane.b32.xlu0 %v882_v32, %s5846_s26  ;;  %s5847_s29 = smov 127  }
  0xfe   : > { %845 = vrot.lane.b32.xlu1 %v823_v35, %s5845_s20  ;;  %963 = vrot.lane.b32.xlu0 %v942_v36, %s5823_s18 }
 0x102   : > { %905 = vrot.lane.b32.xlu1 %v883_v37, %s5846_s26  ;;  %1023 = vrot.lane.b32.xlu0 %v1002_v38, %s5826_s19 }
 0x106   : > { %965 = vrot.lane.b32.xlu1 %v943_v41, %s5823_s18  ;;  %607 = vrot.lane.b32.xlu0 %v584_v43, %s5847_s29  ;;  %s5848_s18 = smov 126  }
 0x10a   : > { %1025 = vrot.lane.b32.xlu1 %v1003_v40, %s5826_s19  ;;  %727 = vrot.lane.b32.xlu0 %v704_v45, %s5824_s28  ;;  %s5849_s28 = smov 95   ;;  %s5850_s19 = smov 63  }
 0x10c   : > { %v600_v46 = vpop.permute.xlu0 %599  ;;  %v596_v47 = vpop.permute.xlu1 %595 }
 0x10e   : > { %667 = vrot.lane.b32.xlu1 %v644_v25, %s5848_s18  ;;  %847 = vrot.lane.b32.xlu0 %v824_v49, %s5845_s20  ;;  %s5851_s20 = smov 62  }
 0x110   : > { %v598_v50 = vpop.permute.xlu1 %597  ;;  %v594_v51 = vpop.permute.xlu0 %593 }
 0x111   : > { %v610_v33 = vsel %vm609_vm0, %v594_v51, %v596_v47  ;;  %v611_v26 = vsel %vm609_vm0, %v596_v47, %v598_v50  ;;  %v612_v27 = vsel %vm609_vm0, %v598_v50, %v600_v46 }
 0x112   : > { %v4713_v55 = vadd.f32 %v610_v33, %v565_v39  ;;  %787 = vrot.lane.b32.xlu1 %v764_v52, %s5849_s28  ;;  %967 = vrot.lane.b32.xlu0 %v944_v54, %s5850_s19  ;;  %v626_v32 = vadd.f32 %v611_v26, %v566_v20  ;;  %v627_v35 = vadd.f32 %v612_v27, %v567_v19  ;;  %s4341_s28 = smov 115   ;;  %s5756_s19 = scalar_lea.hbm %s5813_s16, %s3747_s21 }
 0x114   : > { %v4717_v53 = vpop.permute.xlu1 %601  ;;  %v658_v56 = vpop.permute.xlu0 %657 }
 0x115   : > { %v613_v37 = vsel %vm609_vm0, %v600_v46, %v4717_v53 }
 0x116   : > { %907 = vrot.lane.b32.xlu1 %v4540_v42, %s5846_s26  ;;  %v628_v49 = vadd.f32 %v613_v37, %v568_v29 }
 0x118   : > { %v656_v30 = vpop.permute.xlu1 %655  ;;  %v4721_v57 = vpop.permute.xlu0 %661 }
 0x119   : > { %v671_v28 = vsel %vm669_vm1, %v656_v30, %v658_v56 }
 0x11a   : > { %v686_v43 = vadd.f32 %v671_v28, %v626_v32 }
 0x11c   : > { %v660_v48 = vpop.permute.xlu1 %659  ;;  %v716_v58 = vpop.permute.xlu0 %715 }
 0x11d   : > { %v672_v31 = vsel %vm669_vm1, %v658_v56, %v660_v48  ;;  %v673_v45 = vsel %vm669_vm1, %v660_v48, %v4721_v57 }
 0x11e   : > { %v687_v40 = vadd.f32 %v672_v31, %v627_v35 }
 0x120   : > { %v654_v59 = vpop.permute.xlu1 %653  ;;  %v720_v60 = vpop.permute.xlu0 %719 }
 0x121   : > { %v670_v21 = vsel %vm669_vm1, %v654_v59, %v656_v30  ;;  %v688_v30 = vadd.f32 %v673_v45, %v628_v49 }
 0x122   : > { %v685_v48 = vadd.f32 %v670_v21, %v4713_v55 }
 0x124   : > { %v718_v61 = vpop.permute.xlu1 %717  ;;  %v714_v62 = vpop.permute.xlu0 %713 }
 0x125   : > { %v731_v38 = vsel %vm729_vm2, %v716_v58, %v718_v61  ;;  %v732_v41 = vsel %vm729_vm2, %v718_v61, %v720_v60  ;;  %v730_v52 = vsel %vm729_vm2, %v714_v62, %v716_v58 }
 0x126   : > { %v746_v46 = vadd.f32 %v731_v38, %v686_v43  ;;  %v747_v39 = vadd.f32 %v732_v41, %v687_v40  ;;  %v745_v62 = vadd.f32 %v730_v52, %v685_v48 }
 0x128   : > { %v4723_v63 = vpop.permute.xlu1 %721  ;;  %v778_v0 = vpop.permute.xlu0 %777 }
 0x129   : > { %v733_v54 = vsel %vm729_vm2, %v720_v60, %v4723_v63 }
 0x12a   : > { %v748_v20 = vadd.f32 %v733_v54, %v688_v30 }
 0x12c   : > { %v776_v1 = vpop.permute.xlu1 %775  ;;  %v4725_v2 = vpop.permute.xlu0 %781 }
 0x12d   : > { %v791_v47 = vsel %vm789_vm3, %v776_v1, %v778_v0 }
 0x12e   : > { %v806_v59 = vadd.f32 %v791_v47, %v746_v46 }
 0x130   : > { %v780_v3 = vpop.permute.xlu1 %779  ;;  %v4727_v4 = vpop.permute.xlu0 %835 }
 0x131   : > { %v792_v25 = vsel %vm789_vm3, %v778_v0, %v780_v3  ;;  %v793_v0 = vsel %vm789_vm3, %v780_v3, %v4725_v2 }
 0x132   : > { %v807_v61 = vadd.f32 %v792_v25, %v747_v39 }
 0x134   : > { %v774_v5 = vpop.permute.xlu1 %773  ;;  %v4729_v42 = vpop.permute.xlu0 %839 }
 0x135   : > { %v790_v19 = vsel %vm789_vm3, %v774_v5, %v776_v1 }
 0x136   : > { %v805_v31 = vadd.f32 %v790_v19, %v745_v62 }
 0x138   : > { %v838_v6 = vpop.permute.xlu1 %837  ;;  %v834_v8 = vpop.permute.xlu0 %833 }
 0x139   : > { %v851_v33 = vsel %vm849_vm4, %v4727_v4, %v838_v6  ;;  %v852_v56 = vsel %vm849_vm4, %v838_v6, %v4729_v42  ;;  %v850_v55 = vsel %vm849_vm4, %v834_v8, %v4727_v4 }
 0x13a   : > { %v866_v26 = vadd.f32 %v851_v33, %v806_v59  ;;  %v867_v6 = vadd.f32 %v852_v56, %v807_v61  ;;  %v1004_v59 = vmul.f32 %v4622_v7, %v4490_v13 }
 0x13c   : > { %v4731_v9 = vpop.permute.xlu1 %841  ;;  %v898_v10 = vpop.permute.xlu0 %897 }
 0x13d   : > { %v853_v1 = vsel %vm849_vm4, %v4729_v42, %v4731_v9  ;;  %v865_v42 = vadd.f32 %v850_v55, %v805_v31 }
 0x140   : > { %v4733_v14 = vpop.permute.xlu1 %895  ;;  %v4735_v15 = vpop.permute.xlu0 %901 }
 0x141   : > { %v911_v58 = vsel %vm909_vm5, %v4733_v14, %v898_v10 }
 0x142   : > { %v926_v32 = vadd.f32 %v911_v58, %v866_v26 }
 0x144   : > { %v4737_v16 = vpop.permute.xlu1 %899  ;;  %v4739_v18 = vpop.permute.xlu0 %955 }
 0x145   : > { %v912_v60 = vsel %vm909_vm5, %v898_v10, %v4737_v16  ;;  %v808_v10 = vadd.f32 %v793_v0, %v748_v20  ;;  %v913_v29 = vsel %vm909_vm5, %v4737_v16, %v4735_v15 }
 0x146   : > { %v927_v35 = vadd.f32 %v912_v60, %v867_v6 }
 0x147   : > { %v868_v37 = vadd.f32 %v853_v1, %v808_v10 }
 0x148   : > { %v894_v23 = vpop.permute.xlu1 %893  ;;  %v4745_v24 = vpop.permute.xlu0 %959 }
 0x149   : > { %v910_v4 = vsel %vm909_vm5, %v894_v23, %v4733_v14  ;;  %v928_v21 = vadd.f32 %v913_v29, %v868_v37 }
 0x14a   : > { %v925_v47 = vadd.f32 %v910_v4, %v865_v42 }
 0x14c   : > { %v958_v22 = vpop.permute.xlu1 %957  ;;  %v954_v36 = vpop.permute.xlu0 %953 }
 0x14d   : > { %v971_v3 = vsel %vm969_vm6, %v4739_v18, %v958_v22  ;;  %v972_v5 = vsel %vm969_vm6, %v958_v22, %v4745_v24  ;;  %v970_v22 = vsel %vm969_vm6, %v954_v36, %v4739_v18  ;;  %v569_v36 = vmul.f32 %v4516_v34, %v4692_v44 }
 0x14e   : > { %v986_v38 = vadd.f32 %v971_v3, %v926_v32  ;;  %v987_v41 = vadd.f32 %v972_v5, %v927_v35  ;;  %v985_v46 = vadd.f32 %v970_v22, %v925_v47 }
 0x150   : > { %v4762_v50 = vpop.permute.xlu1 %961  ;;  %v1018_v51 = vpop.permute.xlu0 %1017 }
 0x151   : > { %v973_v45 = vsel %vm969_vm6, %v4745_v24, %v4762_v50 }
 0x152   : > { %v988_v18 = vadd.f32 %v973_v45, %v928_v21 }
 0x154   : > { %v1016_v27 = vpop.permute.xlu1 %1015  ;;  %v4779_v28 = vpop.permute.xlu0 %1021 }
 0x155   : > { %v1031_v8 = vsel %vm1029_vm7, %v1016_v27, %v1018_v51 }
 0x156   : > { %v4802_v14 = vadd.f32 %v1031_v8, %v986_v38 }
 0x158   : > { %v1020_v43 = vpop.permute.xlu1 %1019  ;;  %v604_v40 = vpop.permute.xlu0 %603 }
 0x159   : > { %v1032_v16 = vsel %vm1029_vm7, %v1018_v51, %v1020_v43  ;;  %v1033_v25 = vsel %vm1029_vm7, %v1020_v43, %v4779_v28  ;;  %v614_v49 = vsel %vm609_vm0, %v4717_v53, %v604_v40 }
 0x15a   : > { %v4804_v23 = vadd.f32 %v1032_v16, %v987_v41  ;;  %v4817_v33 = vadd.f32 %v1033_v25, %v988_v18  ;;  %v629_v56 = vadd.f32 %v614_v49, %v569_v36  ;;  %v3956_v36 = vld [vmem:[%s5808_s11 + $0x70] ss:$8 sps:$4 sm:$0xff]  }
 0x15c   : > { %v1014_v24 = vpop.permute.xlu1 %1013  ;;  %v664_v39 = vpop.permute.xlu0 %663  ;;  %v3898_v51 = vpack.i.bf16 %v4804_v23, %v4802_v14 }
 0x15d   : > { %v1030_v52 = vsel %vm1029_vm7, %v1014_v24, %v1016_v27  ;;  %v674_v54 = vsel %vm669_vm1, %v4721_v57, %v664_v39  ;;  %v3957_v24 = vld [vmem:[%s5808_s11 + $0x64] ss:$8 sps:$4 sm:$0xff]  }
 0x15e   : > { %v4819_v30 = vadd.f32 %v1030_v52, %v985_v46  ;;  %3899 = vrot.lane.b32.xlu1 %v3898_v51, %s5847_s29  ;;  %v689_v53 = vadd.f32 %v674_v54, %v629_v56  ;;  %v3959_v52 = vld [vmem:[%s5808_s11 + $0x60] ss:$8 sps:$4 sm:$0xff]  }
 0x160   : > { %v606_v48 = vpop.permute.xlu1 %605  ;;  %v724_v34 = vpop.permute.xlu0 %723  ;;  %v3903_v61 = vpack.i.bf16 %v4819_v30, %v4817_v33 }
 0x161   : > { %v734_v0 = vsel %vm729_vm2, %v4723_v63, %v724_v34  ;;  %v615_v27 = vsel %vm609_vm0, %v604_v40, %v606_v48  ;;  %v570_v63 = vmul.f32 %v4486_v11, %v4692_v44  ;;  %v571_v40 = vmul.f32 %v4488_v12, %v4692_v44 }
 0x162   : > { %v749_v57 = vadd.f32 %v734_v0, %v689_v53  ;;  %1027 = vrot.lane.b32.xlu1 %v1004_v59, %s5851_s20  ;;  %3904 = vrot.lane.b32.xlu0 %v3903_v61, %s5847_s29  ;;  %v3980_v59 = vld [vmem:[%s5808_s11 + $0x174] ss:$8 sps:$4 sm:$0xff]   ;;  %v3983_v0 = vld [vmem:[%s5808_s11 + $0x170] ss:$8 sps:$4 sm:$0xff]   ;;  %s4337_s20 = smov 111  }
 0x163   : > { %v630_v1 = vadd.f32 %v615_v27, %v570_v63  ;;  %1910 = vmatprep.subr.bf16.mxu1 %v3980_v59 }
 0x164   : > { %v666_v19 = vpop.permute.xlu1 %665  ;;  %v784_v58 = vpop.permute.xlu0 %783  ;;  %1911 = vmatpush1.bf16.msra.mxu1 %v3983_v0 }
 0x165   : > { %v794_v60 = vsel %vm789_vm3, %v4725_v2, %v784_v58  ;;  %v675_v55 = vsel %vm669_vm1, %v664_v39, %v666_v19 }
 0x166   : > { %v809_v62 = vadd.f32 %v794_v60, %v749_v57  ;;  %v690_v2 = vadd.f32 %v675_v55, %v630_v1  ;;  %v3992_v55 = vld [vmem:[%s5808_s11 + $0x154] ss:$8 sps:$4 sm:$0xff]  }
 0x168   : > { %v726_v20 = vpop.permute.xlu1 %725  ;;  %v844_v26 = vpop.permute.xlu0 %843 }
 0x169   : > { %v735_v10 = vsel %vm729_vm2, %v724_v34, %v726_v20  ;;  %v854_v4 = vsel %vm849_vm4, %v4731_v9, %v844_v26 }
 0x16a   : > { %v750_v32 = vadd.f32 %v735_v10, %v690_v2  ;;  %v869_v38 = vadd.f32 %v854_v4, %v809_v62  ;;  %v3965_v10 = vld [vmem:[%s5808_s11 + $0x40] ss:$8 sps:$4 sm:$0xff]  }
 0x16c   : > { %v4832_v7 = vpop.permute.xlu1 %785  ;;  %v904_v6 = vpop.permute.xlu0 %903 }
 0x16d   : > { %v795_v31 = vsel %vm789_vm3, %v784_v58, %v4832_v7  ;;  %v914_v42 = vsel %vm909_vm5, %v4735_v15, %v904_v6  ;;  %v3962_v58 = vld [vmem:[%s5808_s11 + $0x50] ss:$8 sps:$4 sm:$0xff]  }
 0x16e   : > { %v810_v8 = vadd.f32 %v795_v31, %v750_v32  ;;  %v929_v15 = vadd.f32 %v914_v42, %v869_v38  ;;  %v3966_v31 = vld [vmem:[%s5808_s11 + $0x34] ss:$8 sps:$4 sm:$0xff]   ;;  %v3995_v32 = vld [vmem:[%s5808_s11 + $0x150] ss:$8 sps:$4 sm:$0xff]   ;;  %v3969_v42 = vld [vmem:[%s5808_s11 + $0x24] ss:$8 sps:$4 sm:$0xff]  }
 0x16f   : > { %v3971_v38 = vld [vmem:[%s5808_s11 + $0x20] ss:$8 sps:$4 sm:$0xff]  }
 0x170   : > { %v4838_v3 = vpop.permute.xlu1 %845  ;;  %v964_v5 = vpop.permute.xlu0 %963 }
 0x171   : > { %v855_v11 = vsel %vm849_vm4, %v844_v26, %v4838_v3  ;;  %v974_v9 = vsel %vm969_vm6, %v4762_v50, %v964_v5  ;;  %v3954_v50 = vld [vmem:[%s5808_s11 + $0x74] ss:$8 sps:$4 sm:$0xff]  }
 0x172   : > { %v870_v41 = vadd.f32 %v855_v11, %v810_v8  ;;  %v989_v49 = vadd.f32 %v974_v9, %v929_v15  ;;  %1869 = vmatprep.subr.bf16.mxu0 %v3954_v50  ;;  %v3968_v11 = vld [vmem:[%s5808_s11 + $0x30] ss:$8 sps:$4 sm:$0xff]   ;;  %v3977_v15 = vld [vmem:[%s5808_s11] ss:$8 sps:$4 sm:$0xff]  }
 0x173   : > { %1870 = vmatpush1.bf16.msra.mxu0 %v3956_v36  ;;  %v3974_v9 = vld [vmem:[%s5808_s11 + $0x10] ss:$8 sps:$4 sm:$0xff]   ;;  %v3996_v36 = vld [vmem:[%s5808_s11 + $0xc4] ss:$8 sps:$4 sm:$0xff]  }
 0x174   : > { %v4843_v35 = vpop.permute.xlu1 %905  ;;  %v1024_v29 = vpop.permute.xlu0 %1023  ;;  %1871 = vmatprep.subr.bf16.mxu0 %v3957_v24  ;;  %v3994_v50 = vld [vmem:[%s5808_s11 + $0xd0] ss:$8 sps:$4 sm:$0xff]   ;;  %v4000_v24 = vld [vmem:[%s5808_s11 + $0xc0] ss:$8 sps:$4 sm:$0xff]  }
 0x175   : > { %v915_v37 = vsel %vm909_vm5, %v904_v6, %v4843_v35  ;;  %v1034_v25 = vsel %vm1029_vm7, %v4779_v28, %v1024_v29  ;;  %v3989_v6 = vld [vmem:[%s5808_s11 + $0x160] ss:$8 sps:$4 sm:$0xff]  }
 0x176   : > { %v930_v21 = vadd.f32 %v915_v37, %v870_v41  ;;  %v4879_v39 = vadd.f32 %v1034_v25, %v989_v49  ;;  %v4004_v37 = vld [vmem:[%s5808_s11 + $0x134] ss:$8 sps:$4 sm:$0xff]   ;;  %v3984_v25 = vld [vmem:[%s5808_s11 + $0xe4] ss:$8 sps:$4 sm:$0xff]   ;;  %v3988_v49 = vld [vmem:[%s5808_s11 + $0xe0] ss:$8 sps:$4 sm:$0xff]  }
 0x177   : > { %1872 = vmatpush1.bf16.msra.mxu0 %v3959_v52  ;;  %v3972_v41 = vld [vmem:[%s5808_s11 + $0x14] ss:$8 sps:$4 sm:$0xff]   ;;  %v4006_v52 = vld [vmem:[%s5808_s11 + $0xb0] ss:$8 sps:$4 sm:$0xff]  }
 0x178   : > { %v966_v43 = vpop.permute.xlu1 %965  ;;  %v4855_v22 = vpop.permute.xlu0 %607 }
 0x179   : > { %v975_v45 = vsel %vm969_vm6, %v964_v5, %v966_v43  ;;  %v616_v16 = vsel %vm609_vm0, %v606_v48, %v4855_v22  ;;  %v3960_v48 = vld [vmem:[%s5808_s11 + $0x54] ss:$8 sps:$4 sm:$0xff]  }
 0x17a   : > { %v631_v47 = vadd.f32 %v616_v16, %v571_v40  ;;  %v990_v46 = vadd.f32 %v975_v45, %v930_v21  ;;  %1873 = vmatprep.subr.bf16.mxu0 %v3960_v48  ;;  %v4010_v40 = vld [vmem:[%s5808_s11 + $0x124] ss:$8 sps:$4 sm:$0xff]   ;;  %v4013_v16 = vld [vmem:[%s5808_s11 + $0x120] ss:$8 sps:$4 sm:$0xff]   ;;  %v3978_v21 = vld [vmem:[%s5808_s11 + $0xf4] ss:$8 sps:$4 sm:$0xff]  }
 0x17b   : > { %1874 = vmatpush1.bf16.msra.mxu0 %v3962_v58  ;;  %v3975_v45 = vld [vmem:[%s5808_s11 + $0x4] ss:$8 sps:$4 sm:$0xff]   ;;  %v4012_v48 = vld [vmem:[%s5808_s11 + $0xa0] ss:$8 sps:$4 sm:$0xff]   ;;  %v4014_v58 = vld [vmem:[%s5808_s11 + $0x94] ss:$8 sps:$4 sm:$0xff]  }
 0x17c   : > { %v4864_v18 = vpop.permute.xlu1 %1025  ;;  %v4866_v12 = vpop.permute.xlu0 %727 }
 0x17d   : > { %v1035_v28 = vsel %vm1029_vm7, %v1024_v29, %v4864_v18  ;;  %v736_v57 = vsel %vm729_vm2, %v726_v20, %v4866_v12  ;;  %v3963_v20 = vld [vmem:[%s5808_s11 + $0x44] ss:$8 sps:$4 sm:$0xff]  }
 0x17e   : > { %v4881_v51 = vadd.f32 %v1035_v28, %v990_v46  ;;  %1875 = vmatprep.subr.bf16.mxu0 %v3963_v20  ;;  %v3998_v29 = vld [vmem:[%s5808_s11 + $0x144] ss:$8 sps:$4 sm:$0xff]   ;;  %v3990_v46 = vld [vmem:[%s5808_s11 + $0xd4] ss:$8 sps:$4 sm:$0xff]  }
 0x17f   : > { %1876 = vmatpush1.bf16.msra.mxu0 %v3965_v10  ;;  %v4002_v28 = vld [vmem:[%s5808_s11 + $0xb4] ss:$8 sps:$4 sm:$0xff]   ;;  %v4025_v10 = vld [vmem:[%s5808_s11 + $0x100] ss:$8 sps:$4 sm:$0xff]  }
 0x180   : > { %v4886_v54 = vpop.permute.xlu1 %667  ;;  %v4888_v56 = vpop.permute.xlu0 %847  ;;  %v3908_v53 = vpack.i.bf16 %v4881_v51, %v4879_v39  ;;  %1877 = vmatprep.subr.bf16.mxu0 %v3966_v31 }
 0x181   : > { %v676_v34 = vsel %vm669_vm1, %v666_v19, %v4886_v54  ;;  %v3986_v19 = vld [vmem:[%s5808_s11 + $0x164] ss:$8 sps:$4 sm:$0xff]   ;;  %v856_v5 = vsel %vm849_vm4, %v4838_v3, %v4888_v56  ;;  %vm2068_vm4 = vcmask 525312  }
 0x182   : > { %v691_v61 = vadd.f32 %v676_v34, %v631_v47  ;;  %3909 = vrot.lane.b32.xlu0 %v3908_v53, %s5847_s29  ;;  %1912 = vmatprep.subr.bf16.mxu1 %v3986_v19  ;;  %v3982_v47 = vld [vmem:[%s5808_s11 + $0xf0] ss:$8 sps:$4 sm:$0xff]   ;;  %v4008_v53 = vld [vmem:[%s5808_s11 + $0xa4] ss:$8 sps:$4 sm:$0xff]   ;;  %v572_v34 = vmul.f32 %v4490_v13, %v4692_v44  ;;  %v4016_v19 = vld [vmem:[%s5808_s11 + $0x114] ss:$8 sps:$4 sm:$0xff]  }
 0x183   : > { %1913 = vmatpush1.bf16.msra.mxu1 %v3989_v6  ;;  %1878 = vmatpush1.bf16.msra.mxu0 %v3968_v11  ;;  %v4018_v13 = vld [vmem:[%s5808_s11 + $0x90] ss:$8 sps:$4 sm:$0xff]  }
 0x184   : > { %v4912_v60 = vpop.permute.xlu1 %787  ;;  %v751_v62 = vadd.f32 %v736_v57, %v691_v61  ;;  %v4914_v26 = vpop.permute.xlu0 %967  ;;  %1914 = vmatprep.subr.bf16.mxu1 %v3992_v55  ;;  %1879 = vmatprep.subr.bf16.mxu0 %v3969_v42  ;;  %v632_v59 = vadd.f32 %v4855_v22, %v572_v34 }
 0x185   : > { %v796_v27 = vsel %vm789_vm3, %v4832_v7, %v4912_v60  ;;  %v976_v63 = vsel %vm969_vm6, %v966_v43, %v4914_v26  ;;  %v4007_v43 = vld [vmem:[%s5808_s11 + $0x130] ss:$8 sps:$4 sm:$0xff]   ;;  %vm2169_vm3 = vcmask 1042432   ;;  %vm2109_vm6 = vcmask 801792  }
 0x186   : > { %v811_v1 = vadd.f32 %v796_v27, %v751_v62  ;;  %v692_v61 = vadd.f32 %v4886_v54, %v632_v59  ;;  %v4020_v27 = vld [vmem:[%s5808_s11 + $0x84] ss:$8 sps:$4 sm:$0xff]  }
 0x187   : > { %1915 = vmatpush1.bf16.msra.mxu1 %v3995_v32  ;;  %1880 = vmatpush1.bf16.msra.mxu0 %v3971_v38  ;;  %v4035_v38 = vld [vmem:[%s5808_s11 + $0x1c4] ss:$8 sps:$4 sm:$0xff]  }
 0x188   : > { %v4936_v2 = vpop.permute.xlu1 %907  ;;  %v871_v7 = vadd.f32 %v856_v5, %v811_v1  ;;  %1916 = vmatprep.subr.bf16.mxu1 %v3998_v29  ;;  %1881 = vmatprep.subr.bf16.mxu0 %v3972_v41  ;;  %v752_v0 = vadd.f32 %v4866_v12, %v692_v61  ;;  %v4019_v12 = vld [vmem:[%s5808_s11 + $0x110] ss:$8 sps:$4 sm:$0xff]   ;;  %v4024_v5 = vld [vmem:[%s5808_s11 + $0x80] ss:$8 sps:$4 sm:$0xff]  }
 0x189   : > { %v916_v3 = vsel %vm909_vm5, %v4843_v35, %v4936_v2  ;;  %v4001_v35 = vld [vmem:[%s5808_s11 + $0x140] ss:$8 sps:$4 sm:$0xff]  }
 0x18a   : > { %v931_v4 = vadd.f32 %v916_v3, %v871_v7  ;;  %v812_v57 = vadd.f32 %v4912_v60, %v752_v0  ;;  %v4028_v3 = vld [vmem:[%s5808_s11 + $0x1f0] ss:$8 sps:$4 sm:$0xff]   ;;  %v4037_v41 = vld [vmem:[%s5808_s11 + $0x1c0] ss:$8 sps:$4 sm:$0xff]  }
 0x18b   : > { %1917 = vmatpush1.bf16.msra.mxu1 %v4001_v35  ;;  %1882 = vmatpush1.bf16.msra.mxu0 %v3974_v9  ;;  %v4041_v9 = vld [vmem:[%s5808_s11 + $0x1a4] ss:$8 sps:$4 sm:$0xff]  }
 0x18c   : > { %v4953_v8 = vadd.f32 %v976_v63, %v931_v4  ;;  %1918 = vmatprep.subr.bf16.mxu1 %v4004_v37  ;;  %1883 = vmatprep.subr.bf16.mxu0 %v3975_v45  ;;  %v872_v44 = vadd.f32 %v4888_v56, %v812_v57  ;;  %v4022_v56 = vld [vmem:[%s5808_s11 + $0x104] ss:$8 sps:$4 sm:$0xff]   ;;  %v4043_v45 = vld [vmem:[%s5808_s11 + $0x1a0] ss:$8 sps:$4 sm:$0xff]  }
 0x18e   : > { %v932_v62 = vadd.f32 %v4936_v2, %v872_v44  ;;  %v4026_v2 = vld [vmem:[%s5808_s11 + $0x1f4] ss:$8 sps:$4 sm:$0xff]  }
 0x18f   : > { %1919 = vmatpush1.bf16.msra.mxu1 %v4007_v43  ;;  %1884 = vmatpush1.bf16.msra.mxu0 %v3977_v15  ;;  %v4038_v43 = vld [vmem:[%s5808_s11 + $0x1b4] ss:$8 sps:$4 sm:$0xff]   ;;  %v4046_v15 = vld [vmem:[%s5808_s11 + $0x190] ss:$8 sps:$4 sm:$0xff]  }
 0x190   : > { %1920 = vmatprep.subr.bf16.mxu1 %v4010_v40  ;;  %1885 = vmatprep.subr.bf16.mxu0 %v3978_v21  ;;  %v992_v29 = vadd.f32 %v4914_v26, %v932_v62  ;;  %v4029_v26 = vld [vmem:[%s5808_s11 + $0x1e4] ss:$8 sps:$4 sm:$0xff]   ;;  %v4040_v40 = vld [vmem:[%s5808_s11 + $0x1b0] ss:$8 sps:$4 sm:$0xff]  }
 0x191   : > { %v4047_v21 = vld [vmem:[%s5808_s11 + $0x184] ss:$8 sps:$4 sm:$0xff]  }
 0x193   : > { %1921 = vmatpush1.bf16.msra.mxu1 %v4013_v16  ;;  %1886 = vmatpush2.bf16.msra.mxu0 %v3982_v47  ;;  %v4044_v16 = vld [vmem:[%s5808_s11 + $0x194] ss:$8 sps:$4 sm:$0xff]   ;;  %v4049_v47 = vld [vmem:[%s5808_s11 + $0x180] ss:$8 sps:$4 sm:$0xff]  }
 0x194   : > { %1887 = vmatprep.subr.bf16.mxu0 %v3984_v25  ;;  %1922 = vmatprep.subr.bf16.mxu1 %v4016_v19 }
 0x197   : > { %1888 = vmatpush2.bf16.msra.mxu0 %v3988_v49  ;;  %1923 = vmatpush1.bf16.msra.mxu1 %v4019_v12 }
 0x198   : > { %1889 = vmatprep.subr.bf16.mxu0 %v3990_v46  ;;  %1924 = vmatprep.subr.bf16.mxu1 %v4022_v56 }
 0x19b   : > { %1890 = vmatpush2.bf16.msra.mxu0 %v3994_v50  ;;  %1925 = vmatpush1.bf16.msra.mxu1 %v4025_v10  ;;  %v4061_v10 = vld [vmem:[%s5808_s11 + $0x244] ss:$8 sps:$4 sm:$0xff]  }
 0x19c   : > { %1891 = vmatprep.subr.bf16.mxu0 %v3996_v36  ;;  %1926 = vmatprep.subr.bf16.mxu1 %v4026_v2  ;;  %v4059_v2 = vld [vmem:[%s5808_s11 + $0x240] ss:$8 sps:$4 sm:$0xff]  }
 0x19f   : > { %1892 = vmatpush2.bf16.msra.mxu0 %v4000_v24  ;;  %1927 = vmatpush2.bf16.msra.mxu1 %v4028_v3  ;;  %v4052_v24 = vld [vmem:[%s5808_s11 + $0x274] ss:$8 sps:$4 sm:$0xff]   ;;  %v4065_v3 = vld [vmem:[%s5808_s11 + $0x220] ss:$8 sps:$4 sm:$0xff]  }
 0x1a0   : > { %1893 = vmatprep.subr.bf16.mxu0 %v4002_v28  ;;  %1928 = vmatprep.subr.bf16.mxu1 %v4029_v26  ;;  %v4077_v26 = vld [vmem:[%s5808_s11 + $0x200] ss:$8 sps:$4 sm:$0xff]  }
 0x1a3   : > { %1894 = vmatpush2.bf16.msra.mxu0 %v4006_v52 }
 0x1a4   : > { %1895 = vmatprep.subr.bf16.mxu0 %v4008_v53 }
 0x1a7   : > { %1896 = vmatpush2.bf16.msra.mxu0 %v4012_v48  ;;  %v4070_v48 = vld [vmem:[%s5808_s11 + $0x374] ss:$8 sps:$4 sm:$0xff]  }
 0x1a8   : > { %1897 = vmatprep.subr.bf16.mxu0 %v4014_v58 }
 0x1ab   : > { %1898 = vmatpush2.bf16.msra.mxu0 %v4018_v13 }
 0x1ac   : > { %1899 = vmatprep.subr.bf16.mxu0 %v4020_v27 }
 0x1af   : > { %1900 = vmatpush2.bf16.msra.mxu0 %v4024_v5  ;;  %v4056_v5 = vld [vmem:[%s5808_s11 + $0x250] ss:$8 sps:$4 sm:$0xff]  }
 0x1b0   : > { %1951 = vmatprep.subr.bf16.mxu0 %v4052_v24  ;;  %v4101_v24 = vld [vmem:[%s5808_s11 + $0x2c0] ss:$8 sps:$4 sm:$0xff]  }
 0x1d0   : > { %v3900_v22 = vpop.permute.xlu1 %3899 }
 0x1d1   : > { %v3902_v54 = vunpack.i.h.bf16 %v3900_v22  ;;  %v3901_v60 = vunpack.i.l.bf16 %v3900_v22 }
 0x1d3   : > { %v1078_v63 = vsel %vm609_vm0, %v3901_v60, %v3902_v54 }
 0x1d4   : > { %v1028_v20 = vpop.permute.xlu1 %1027  ;;  %v3905_v6 = vpop.permute.xlu0 %3904  ;;  %v1093_v11 = vmax.f32 %v4802_v14, %v1078_v63  ;;  %v4031_v14 = vld [vmem:[%s5808_s11 + $0x1e0] ss:$8 sps:$4 sm:$0xff]  }
 0x1d5   : > { %v3907_v55 = vunpack.i.h.bf16 %v3905_v6  ;;  %v3906_v1 = vunpack.i.l.bf16 %v3905_v6  ;;  %v1036_v7 = vsel %vm1029_vm7, %v4864_v18, %v1028_v20  ;;  %v1052_v35 = vadd.f32 %v1028_v20, %v992_v29  ;;  %1929 = vmatpush2.bf16.msra.mxu1 %v4031_v14  ;;  %v4055_v6 = vld [vmem:[%s5808_s11 + $0x264] ss:$8 sps:$4 sm:$0xff]   ;;  %v4073_v29 = vld [vmem:[%s5808_s11 + $0x214] ss:$8 sps:$4 sm:$0xff]  }
 0x1d6   : > { %v5074_v18 = vadd.f32 %v1036_v7, %v4953_v8  ;;  %v4034_v8 = vld [vmem:[%s5808_s11 + $0x1d0] ss:$8 sps:$4 sm:$0xff]   ;;  %v4064_v7 = vld [vmem:[%s5808_s11 + $0x234] ss:$8 sps:$4 sm:$0xff]   ;;  %vm2081_vm7 = vcmask 531458  }
 0x1d7   : > { %v1079_v31 = vsel %vm609_vm0, %v3902_v54, %v3906_v1  ;;  %v1077_v32 = vsel %vm609_vm0, %v3907_v55, %v3901_v60  ;;  %v4050_v54 = vld [vmem:[%s5808_s11 + $0x270] ss:$8 sps:$4 sm:$0xff]   ;;  %v4053_v55 = vld [vmem:[%s5808_s11 + $0x260] ss:$8 sps:$4 sm:$0xff]  }
 0x1d8   : > { %v1092_v4 = vmax.f32 %v4819_v30, %v1077_v32  ;;  %v5071_v42 = vmax.f32 %v4804_v23, %v1079_v31  ;;  %v4032_v23 = vld [vmem:[%s5808_s11 + $0x1d4] ss:$8 sps:$4 sm:$0xff]   ;;  %v3918_v30 = vpack.i.bf16 %v1052_v35, %v5074_v18  ;;  %v4062_v31 = vld [vmem:[%s5808_s11 + $0x230] ss:$8 sps:$4 sm:$0xff]   ;;  %v4067_v32 = vld [vmem:[%s5808_s11 + $0x224] ss:$8 sps:$4 sm:$0xff]  }
 0x1d9   : > { %1930 = vmatprep.subr.bf16.mxu1 %v4032_v23 }
 0x1da   : > { %1108 = vrot.lane.b32.xlu0 %v1092_v4, %s5852_s1  ;;  %v3913_v37 = vpack.i.bf16 %v5071_v42, %v1093_v11  ;;  %1931 = vmatpush2.bf16.msra.mxu1 %v4034_v8 }
 0x1db   : > { %1932 = vmatprep.subr.bf16.mxu1 %v4035_v38 }
 0x1dc   : > { %3914 = vrot.lane.b32.xlu1 %v3913_v37, %s5852_s1 }
 0x1de   : > { %1933 = vmatpush2.bf16.msra.mxu1 %v4037_v41 }
 0x1df   : > { %1934 = vmatprep.subr.bf16.mxu1 %v4038_v43 }
 0x1e0   : > { %3919 = vrot.lane.b32.xlu1 %v3918_v30, %s5847_s29  ;;  %v4085_v30 = vld [vmem:[%s5808_s11 + $0x2f4] ss:$8 sps:$4 sm:$0xff]  }
 0x1e2   : > { %1935 = vmatpush2.bf16.msra.mxu1 %v4040_v40  ;;  %v4068_v40 = vld [vmem:[%s5808_s11 + $0x370] ss:$8 sps:$4 sm:$0xff]  }
 0x1e3   : > { %1936 = vmatprep.subr.bf16.mxu1 %v4041_v9  ;;  %v4083_v9 = vld [vmem:[%s5808_s11 + $0x2f0] ss:$8 sps:$4 sm:$0xff]  }
 0x1e6   : > { %1937 = vmatpush2.bf16.msra.mxu1 %v4043_v45  ;;  %v4076_v45 = vld [vmem:[%s5808_s11 + $0x364] ss:$8 sps:$4 sm:$0xff]  }
 0x1e7   : > { %1938 = vmatprep.subr.bf16.mxu1 %v4044_v16  ;;  %v4074_v16 = vld [vmem:[%s5808_s11 + $0x360] ss:$8 sps:$4 sm:$0xff]  }
 0x1ea   : > { %1939 = vmatpush2.bf16.msra.mxu1 %v4046_v15  ;;  %v4089_v15 = vld [vmem:[%s5808_s11 + $0x2e0] ss:$8 sps:$4 sm:$0xff]  }
 0x1eb   : > { %1940 = vmatprep.subr.bf16.mxu1 %v4047_v21  ;;  %v4082_v21 = vld [vmem:[%s5808_s11 + $0x354] ss:$8 sps:$4 sm:$0xff]  }
 0x1ee   : > { %1941 = vmatpush2.bf16.msra.mxu1 %v4049_v47  ;;  %v4097_v47 = vld [vmem:[%s5808_s11 + $0x2d4] ss:$8 sps:$4 sm:$0xff]  }
 0x1ef   : > { %1992 = vmatprep.subr.bf16.mxu1 %v4070_v48  ;;  %v4092_v48 = vld [vmem:[%s5808_s11 + $0x330] ss:$8 sps:$4 sm:$0xff]  }
 0x1f4   : > { %v3910_v25 = vpop.permute.xlu0 %3909 }
 0x1f5   : > { %v3912_v49 = vunpack.i.h.bf16 %v3910_v25  ;;  %v3911_v46 = vunpack.i.l.bf16 %v3910_v25  ;;  %v4080_v25 = vld [vmem:[%s5808_s11 + $0x350] ss:$8 sps:$4 sm:$0xff]  }
 0x1f7   : > { %v1080_v50 = vsel %vm609_vm0, %v3906_v1, %v3911_v46  ;;  %v1081_v36 = vsel %vm609_vm0, %v3911_v46, %v3912_v49  ;;  %v1271_v1 = vld [vmem:[%s5799_s2] sm:$0x3f] }
 0x1f8   : > { %v5129_v28 = vmax.f32 %v4817_v33, %v1080_v50  ;;  %v5132_v52 = vmax.f32 %v4879_v39, %v1081_v36  ;;  %v4088_v46 = vld [vmem:[%s5808_s11 + $0x344] ss:$8 sps:$4 sm:$0xff]   ;;  %v4086_v36 = vld [vmem:[%s5808_s11 + $0x340] ss:$8 sps:$4 sm:$0xff]  }
 0x1f9   : > { %v4103_v50 = vld [vmem:[%s5808_s11 + $0x2c4] ss:$8 sps:$4 sm:$0xff]  }
 0x1fa   : > { %v3923_v53 = vpack.i.bf16 %v5132_v52, %v5129_v28 }
 0x1fc   : > { %3924 = vrot.lane.b32.xlu0 %v3923_v53, %s5852_s1  ;;  %v4109_v53 = vld [vmem:[%s5808_s11 + $0x2b4] ss:$8 sps:$4 sm:$0xff]  }
 0x24c   : > { %v1109_v0 = vpop.permute.xlu0 %1108 }
 0x24e   : > { %v3915_v34 = vpop.permute.xlu1 %3914 }
 0x24f   : > { %v3917_v59 = vunpack.i.h.bf16 %v3915_v34  ;;  %v3916_v61 = vunpack.i.l.bf16 %v3915_v34  ;;  %v4107_v34 = vld [vmem:[%s5808_s11 + $0x2b0] ss:$8 sps:$4 sm:$0xff]  }
 0x251   : > { %v1125_v33 = vsel %vm729_vm2, %v3916_v61, %v3917_v59  ;;  %v1124_v39 = vsel %vm729_vm2, %v1109_v0, %v3916_v61  ;;  %v4115_v61 = vld [vmem:[%s5808_s11 + $0x2a4] ss:$8 sps:$4 sm:$0xff]   ;;  %v4098_v0 = vld [vmem:[%s5808_s11 + $0x320] ss:$8 sps:$4 sm:$0xff]  }
 0x252   : > { %v3920_v57 = vpop.permute.xlu1 %3919  ;;  %v1140_v58 = vmax.f32 %v1093_v11, %v1125_v33  ;;  %v1139_v19 = vmax.f32 %v1092_v4, %v1124_v39  ;;  %v4071_v4 = vld [vmem:[%s5808_s11 + $0x210] ss:$8 sps:$4 sm:$0xff]   ;;  %v4079_v11 = vld [vmem:[%s5808_s11 + $0x204] ss:$8 sps:$4 sm:$0xff]   ;;  %v4113_v33 = vld [vmem:[%s5808_s11 + $0x2a0] ss:$8 sps:$4 sm:$0xff]  }
 0x253   : > { %v3922_v13 = vunpack.i.h.bf16 %v3920_v57  ;;  %v3921_v44 = vunpack.i.l.bf16 %v3920_v57  ;;  %v4106_v39 = vld [vmem:[%s5808_s11 + $0x314] ss:$8 sps:$4 sm:$0xff]  }
 0x254   : > { %v1148_v22 = vpack.c.bf16 %v1140_v58, %v1140_v58  ;;  %v1147_v12 = vpack.c.bf16 %v1139_v19, %v1139_v19  ;;  %v4121_v57 = vld [vmem:[%s5808_s11 + $0x294] ss:$8 sps:$4 sm:$0xff]   ;;  %v4335_v58 = vmov 65535  }
 0x255   : > { %v5145_v60 = vmax.f32 %v1052_v35, %v3922_v13  ;;  %v1082_v62 = vsel %vm609_vm0, %v3912_v49, %v3921_v44  ;;  %v1083_v20 = vsel %vm609_vm0, %v3921_v44, %v3922_v13  ;;  %v4095_v49 = vld [vmem:[%s5808_s11 + $0x2d0] ss:$8 sps:$4 sm:$0xff]   ;;  %v1861_v19 = vsel %vm1859_vm8, 4294967295, %v4335_v58  ;;  %v4112_v44 = vld [vmem:[%s5808_s11 + $0x304] ss:$8 sps:$4 sm:$0xff]  }
 0x256   : > { %1901 = vmatprep.mubr.bf16.mxu0 %v1148_v22  ;;  %v5153_v27 = vmax.f32 %v4881_v51, %v1082_v62  ;;  %v5156_v56 = vmax.f32 %v5074_v18, %v1083_v20  ;;  %v4058_v51 = vld [vmem:[%s5808_s11 + $0x254] ss:$8 sps:$4 sm:$0xff]   ;;  %v4104_v13 = vld [vmem:[%s5808_s11 + $0x310] ss:$8 sps:$4 sm:$0xff]   ;;  %v5305_v62 = vsel %vm1860_vm9, %v1861_v19, 0  ;;  %v2246_v58 = vld [vmem:[%s5801_s4] sm:$0xff] }
 0x257   : > { %1122 = vrot.lane.b32.xlu0 %v5145_v60, %s5852_s1  ;;  %1902 = vmatmul.mubr.bf16.vlgmr.msra.gmra.mxu0 %v1147_v12  ;;  %v4119_v22 = vld [vmem:[%s5808_s11 + $0x290] ss:$8 sps:$4 sm:$0xff]   ;;  %v4118_v12 = vld [vmem:[%s5808_s11 + $0x394] ss:$8 sps:$4 sm:$0x7f]   ;;  %v2247_v19 = vld [vmem:[%s5801_s4 + $0x8] sm:$0xff] }
 0x258   : > { %v3928_v63 = vpack.i.bf16 %v5156_v56, %v5153_v27  ;;  %1952 = vmatpush1.bf16.msra.mxu0 %v4050_v54  ;;  %v4127_v54 = vld [vmem:[%s5808_s11 + $0x284] ss:$8 sps:$4 sm:$0xff]   ;;  %v4110_v20 = vld [vmem:[%s5808_s11 + $0x300] ss:$8 sps:$4 sm:$0xff]   ;;  %vm2121_vm8 = vcmask 793600   ;;  %vm2076_vm9 = vcmask 924672  }
 0x259   : > { %1953 = vmatprep.subr.bf16.mxu0 %v4055_v6  ;;  %v4116_v6 = vld [vmem:[%s5808_s11 + $0x390] ss:$8 sps:$4 sm:$0x7f]  }
 0x25a   : > { %3929 = vrot.lane.b32.xlu1 %v3928_v63, %s5852_s1  ;;  %v4125_v63 = vld [vmem:[%s5808_s11 + $0x280] ss:$8 sps:$4 sm:$0xff]  }
 0x25c   : > { %1954 = vmatpush1.bf16.msra.mxu0 %v4053_v55  ;;  %v1867_v55 = vand.u32 %v4118_v12, %v5305_v62 }
 0x25d   : > { %1955 = vmatprep.subr.bf16.mxu0 %v4058_v51  ;;  %v1864_v51 = vand.u32 %v4116_v6, %v5305_v62 }
 0x25e   : > { %1274 = vperm.xlu1 %3933, %v1271_v1   ;;  %v4124_v1 = vld [vmem:[%s5808_s11 + $0x384] ss:$8 sps:$4 sm:$0xff]  }
 0x260   : > { %1956 = vmatpush1.bf16.msra.mxu0 %v4056_v5  ;;  %v4122_v5 = vld [vmem:[%s5808_s11 + $0x380] ss:$8 sps:$4 sm:$0xff]  }
 0x261   : > { %1957 = vmatprep.subr.bf16.mxu0 %v4061_v10 }
 0x264   : > { %1958 = vmatpush1.bf16.msra.mxu0 %v4059_v2 }
 0x265   : > { %1959 = vmatprep.subr.bf16.mxu0 %v4064_v7 }
 0x268   : > { %1960 = vmatpush1.bf16.msra.mxu0 %v4062_v31 }
 0x269   : > { %1961 = vmatprep.subr.bf16.mxu0 %v4067_v32 }
 0x26c   : > { %1962 = vmatpush1.bf16.msra.mxu0 %v4065_v3 }
 0x26d   : > { %1963 = vmatprep.subr.bf16.mxu0 %v4073_v29 }
 0x26e   : > { %v5202_v18 = vpop.permute.xlu0 %3924 }
 0x26f   : > { %v3927_v35 = vunpack.i.h.bf16 %v5202_v18  ;;  %v3926_v37 = vunpack.i.l.bf16 %v5202_v18 }
 0x270   : > { %1964 = vmatpush1.bf16.msra.mxu0 %v4071_v4 }
 0x271   : > { %v1127_v14 = vsel %vm729_vm2, %v3926_v37, %v3927_v35  ;;  %v1126_v23 = vsel %vm729_vm2, %v3917_v59, %v3926_v37  ;;  %1965 = vmatprep.subr.bf16.mxu0 %v4079_v11  ;;  %v4100_v59 = vld [vmem:[%s5808_s11 + $0x324] ss:$8 sps:$4 sm:$0xff]  }
 0x272   : > { %v1142_v8 = vmax.f32 %v5129_v28, %v1127_v14  ;;  %v1141_v38 = vmax.f32 %v5071_v42, %v1126_v23  ;;  %v4091_v42 = vld [vmem:[%s5808_s11 + $0x2e4] ss:$8 sps:$4 sm:$0xff]   ;;  %v4094_v28 = vld [vmem:[%s5808_s11 + $0x334] ss:$8 sps:$4 sm:$0xff]  }
 0x274   : > { %v1150_v41 = vpack.c.bf16 %v1142_v8, %v1142_v8  ;;  %v1149_v43 = vpack.c.bf16 %v1141_v38, %v1141_v38  ;;  %1966 = vmatpush1.bf16.msra.mxu0 %v4077_v26 }
 0x275   : > { %1967 = vmatprep.subr.bf16.mxu0 %v4085_v30 }
 0x276   : > { %1942 = vmatprep.mubr.bf16.mxu1 %v1150_v41 }
 0x277   : > { %1943 = vmatmul.mubr.bf16.vlgmr.msra.gmra.mxu1 %v1149_v43 }
 0x278   : > { %1993 = vmatpush1.bf16.msra.mxu1 %v4068_v40  ;;  %1968 = vmatpush2.bf16.msra.mxu0 %v4083_v9 }
 0x279   : > { %1994 = vmatprep.subr.bf16.mxu1 %v4076_v45  ;;  %1969 = vmatprep.subr.bf16.mxu0 %v4091_v42 }
 0x27c   : > { %1995 = vmatpush1.bf16.msra.mxu1 %v4074_v16  ;;  %1970 = vmatpush2.bf16.msra.mxu0 %v4089_v15 }
 0x27d   : > { %1996 = vmatprep.subr.bf16.mxu1 %v4082_v21  ;;  %1971 = vmatprep.subr.bf16.mxu0 %v4097_v47 }
 0x280   : > { %1997 = vmatpush1.bf16.msra.mxu1 %v4080_v25  ;;  %1972 = vmatpush2.bf16.msra.mxu0 %v4095_v49 }
 0x281   : > { %1998 = vmatprep.subr.bf16.mxu1 %v4088_v46  ;;  %1973 = vmatprep.subr.bf16.mxu0 %v4103_v50 }
 0x284   : > { %1999 = vmatpush1.bf16.msra.mxu1 %v4086_v36  ;;  %1974 = vmatpush2.bf16.msra.mxu0 %v4101_v24 }
 0x285   : > { %2000 = vmatprep.subr.bf16.mxu1 %v4094_v28  ;;  %1975 = vmatprep.subr.bf16.mxu0 %v4109_v53 }
 0x288   : > { %2001 = vmatpush1.bf16.msra.mxu1 %v4092_v48  ;;  %1976 = vmatpush2.bf16.msra.mxu0 %v4107_v34 }
 0x289   : > { %2002 = vmatprep.subr.bf16.mxu1 %v4100_v59  ;;  %1977 = vmatprep.subr.bf16.mxu0 %v4115_v61 }
 0x28c   : > { %2003 = vmatpush1.bf16.msra.mxu1 %v4098_v0  ;;  %1978 = vmatpush2.bf16.msra.mxu0 %v4113_v33 }
 0x28d   : > { %2004 = vmatprep.subr.bf16.mxu1 %v4106_v39  ;;  %1979 = vmatprep.subr.bf16.mxu0 %v4121_v57 }
 0x290   : > { %2005 = vmatpush1.bf16.msra.mxu1 %v4104_v13  ;;  %1980 = vmatpush2.bf16.msra.mxu0 %v4119_v22 }
 0x291   : > { %2006 = vmatprep.subr.bf16.mxu1 %v4112_v44  ;;  %1981 = vmatprep.subr.bf16.mxu0 %v4127_v54 }
 0x294   : > { %2007 = vmatpush1.bf16.msra.mxu1 %v4110_v20  ;;  %1982 = vmatpush2.bf16.msra.mxu0 %v4125_v63 }
 0x295   : > { %2020 = vmatprep.subr.bf16.mxu1 %v1867_v55  ;;  %2568 = vmatprep.subr.bf16.mxu0 %v4325_v17 }
 0x298   : > { %2021 = vmatpush2.bf16.msra.mxu1 %v1864_v51 }
 0x299   : > { %2022 = vmatprep.subr.bf16.mxu1 %v4124_v1 }
 0x29c   : > { %2023 = vmatpush2.bf16.msra.mxu1 %v4122_v5 }
 0x2c9   : > { %v1123_v10 = vpop.permute.xlu0 %1122 }
 0x2ca   : > { %v1146_v2 = vmax.f32 %v5145_v60, %v1123_v10 }
 0x2cc   : > { %v1154_v7 = vpack.c.bf16 %v1146_v2, %v1146_v2  ;;  %v3930_v31 = vpop.permute.xlu1 %3929 }
 0x2cd   : > { %v3932_v32 = vunpack.i.h.bf16 %v3930_v31  ;;  %v3931_v3 = vunpack.i.l.bf16 %v3930_v31 }
 0x2ce   : > { %3636 = vmatprep.mubr.msk.bf16.mxu1 %vm1855_vm10, %v1154_v7  ;;  %vm2387_vm10 = vcmask 1040384  }
 0x2cf   : > { %v1130_v29 = vsel %vm729_vm2, %v3932_v32, %v1123_v10  ;;  %v1128_v4 = vsel %vm729_vm2, %v3927_v35, %v3931_v3  ;;  %v1129_v11 = vsel %vm729_vm2, %v3931_v3, %v3932_v32 }
 0x2d0   : > { %v1145_v37 = vmax.f32 %v5156_v56, %v1130_v29  ;;  %v1143_v26 = vmax.f32 %v5132_v52, %v1128_v4  ;;  %v1144_v60 = vmax.f32 %v5153_v27, %v1129_v11 }
 0x2d2   : > { %v1152_v14 = vpack.c.bf16 %v1144_v60, %v1144_v60  ;;  %v1153_v23 = vpack.c.bf16 %v1145_v37, %v1145_v37  ;;  %v1151_v30 = vpack.c.bf16 %v1143_v26, %v1143_v26 }
 0x2d4   : > { %1983 = vmatprep.mubr.bf16.mxu0 %v1152_v14  ;;  %2025 = vmatmul.mubr.bf16.vlgmr.msra.gmra.mxu1 %v1153_v23 }
 0x2d5   : > { %1984 = vmatmul.mubr.bf16.vlgmr.msra.gmra.mxu0 %v1151_v30  ;;  %2208 = vmatprep.mubr.bf16.mxu1 %v4325_v17 }
 0x2d9   : > { %v1275_v41 = vpop.permute.xlu1 %1274 }
 0x317   : > { %v1903_v8 = vpop.f32.mrf.mxu0 }
 0x318   : > { %v1904_v43 = vadd.f32 %v1903_v8, %v1275_v41 }
 0x319   : > { %v1905_v18 = vpop.f32.mrf.mxu0 }
 0x31a   : > { %v1906_v56 = vadd.f32 %v1905_v18, %v1275_v41 }
 0x31b   : > { %v1907_v38 = vpop.f32.mrf.mxu0 }
 0x31d   : > { %v1908_v35 = vpop.f32.mrf.mxu0 }
 0x337   : > { %v1944_v40 = vpop.f32.mrf.mxu1 }
 0x338   : > { %v1945_v9 = vadd.f32 %v1944_v40, %v1904_v43 }
 0x339   : > { %v1946_v52 = vpop.f32.mrf.mxu1 }
 0x33a   : > { %v1947_v45 = vadd.f32 %v1946_v52, %v1906_v56 }
 0x33b   : > { %v1948_v27 = vpop.f32.mrf.mxu1 }
 0x33d   : > { %v1949_v42 = vpop.f32.mrf.mxu1 }
 0x394   : > { %v2026_v16 = vpop.f32.mrf.mxu1 }
 0x395   : > { %v1985_v15 = vpop.f32.mrf.mxu0 }
 0x396   : > { %v1986_v21 = vadd.f32 %v1985_v15, %v1945_v9  ;;  %v2028_v47 = vpop.f32.mrf.mxu1 }
 0x397   : > { %v1987_v25 = vpop.f32.mrf.mxu0 }
 0x398   : > { %v2027_v49 = vadd.f32 %v2026_v16, %v1986_v21  ;;  %v1988_v46 = vadd.f32 %v1987_v25, %v1947_v45  ;;  %v2030_v50 = vpop.f32.mrf.mxu1 }
 0x399   : > { %v1989_v36 = vpop.f32.mrf.mxu0 }
 0x39a   : > { %v2033_v24 = vmax.f32 %v2027_v49, 0.0  ;;  %v2029_v28 = vadd.f32 %v2028_v47, %v1988_v46  ;;  %v2031_v53 = vpop.f32.mrf.mxu1  ;;  %v4131_v46 = vld [vmem:[%s5809_s12 + $0x74] ss:$8 sps:$4 sm:$0xff]   ;;  %v4128_v36 = vld [vmem:[%s5800_s3] sm:$0xff]  }
 0x39b   : > { %v1990_v48 = vpop.f32.mrf.mxu0  ;;  %v4132_v53 = vld [vmem:[%s5809_s12 + $0x60] ss:$8 sps:$4 sm:$0xff]  }
 0x39c   : > { %2035 = vst [vmem:[#allocation2] sm:$0x3f] %v2033_v24  ;;  %v2034_v34 = vmax.f32 %v2029_v28, 0.0  ;;  %2127 = vrot.lane.b32.xlu0 %v2033_v24, %s5852_s1  ;;  %v2040_v59 = vrot.slane %v2033_v24, 2  ;;  %v2055_v0 = vrot.slane %v2033_v24, 4  ;;  %v2070_v39 = vrot.slane %v2033_v24, 6 }
 0x39d   : > { %v4134_v28 = vld [vmem:[%s5809_s12 + $0x64] ss:$8 sps:$4 sm:$0xff]   ;;  %v4137_v48 = vld [vmem:[%s5809_s12 + $0x54] ss:$8 sps:$4 sm:$0xff]  }
 0x39e   : > { %2129 = vrot.lane.b32.xlu1 %v2034_v34, %s5852_s1  ;;  %2037 = vst.msk [vmem:[#allocation2 + $0x8] sm:$0x3f] %vm2036_vm11, %v2034_v34  ;;  %v2041_v61 = vrot.slane %v2034_v34, 2  ;;  %v2056_v33 = vrot.slane %v2034_v34, 4  ;;  %v2071_v57 = vrot.slane %v2034_v34, 6  ;;  %s4340_s1 = smov 113  }
 0x3a0   : > { %2083 = vrot.lane.b32.xlu0 %v2033_v24, %s4336_s23  ;;  %v4129_v24 = vld [vmem:[%s5809_s12 + $0x70] ss:$8 sps:$4 sm:$0xff]  }
 0x3a2   : > { %2085 = vrot.lane.b32.xlu1 %v2034_v34, %s4336_s23  ;;  %v4135_v34 = vld [vmem:[%s5809_s12 + $0x50] ss:$8 sps:$4 sm:$0xff]  }
 0x3a4   : > { %2093 = vrot.lane.b32.xlu0 %v2040_v59, %s4337_s20 }
 0x3a6   : > { %2095 = vrot.lane.b32.xlu1 %v2041_v61, %s4337_s20  ;;  %s4344_s20 = smov [#allocation3]  }
 0x3a8   : > { %2105 = vrot.lane.b32.xlu0 %v2055_v0, %s4338_s24 }
 0x3aa   : > { %2107 = vrot.lane.b32.xlu1 %v2056_v33, %s4338_s24  ;;  %s4260_s24 = sshll.u32 %s4344_s20, 4  ;;  %s4261_s24 = int_to_ptr.vmem [resolvable:$false] %s4260_s24 }
 0x3ac   : > { %2117 = vrot.lane.b32.xlu0 %v2070_v39, %s4339_s27 }
 0x3ae   : > { %2119 = vrot.lane.b32.xlu1 %v2071_v57, %s4339_s27  ;;  %s4262_s27 = scalar_lea.vmem %s4261_s24, 32 }
 0x3b0   : > { %2057 = vrot.lane.b32.xlu0 %v2055_v0, %s5848_s18  ;;  %v4143_v0 = vld [vmem:[%s5809_s12 + $0x34] ss:$8 sps:$4 sm:$0xff]  }
 0x3b2   : > { %2059 = vrot.lane.b32.xlu1 %v2056_v33, %s5848_s18  ;;  %v4141_v33 = vld [vmem:[%s5809_s12 + $0x30] ss:$8 sps:$4 sm:$0xff]  }
 0x3b4   : > { %2072 = vrot.lane.b32.xlu0 %v2070_v39, %s4340_s1  ;;  %v4146_v39 = vld [vmem:[%s5809_s12 + $0x24] ss:$8 sps:$4 sm:$0xff]  }
 0x3b6   : > { %2074 = vrot.lane.b32.xlu1 %v2071_v57, %s4340_s1  ;;  %v4144_v57 = vld [vmem:[%s5809_s12 + $0x20] ss:$8 sps:$4 sm:$0xff]   ;;  %s510_s1 = sand.u32 1, %s4308_s22  }
 0x3b7   : > { %s511_s17 = scalar_lea.vmem [#allocation3], %s510_s1  ;;  %s3448_s23 = scalar_lea.sflag [#allocation4], %s510_s1 }
 0x3b8   : > { %2042 = vrot.lane.b32.xlu0 %v2040_v59, %s5847_s29  ;;  %v4140_v59 = vld [vmem:[%s5809_s12 + $0x44] ss:$8 sps:$4 sm:$0xff]   ;;  %s3460_s18 = sshll.u32 %s511_s17, 4  ;;  %s5758_s18 = int_to_ptr.vmem [resolvable:$true] %s3460_s18 }
 0x3b9   : > { %s4256_s25 = scalar_lea.vmem %s5758_s18, 16  ;;  %p4263_p0 = scmp.lt.s32.totalorder %s5758_s18, %s4261_s24 }
 0x3ba   : > { %2044 = vrot.lane.b32.xlu1 %v2041_v61, %s5847_s29  ;;  %v4138_v61 = vld [vmem:[%s5809_s12 + $0x40] ss:$8 sps:$4 sm:$0xff]   ;;  %p4257_p11 = scmp.ne.s32.totalorder %s5758_s18, %s4256_s25  ;;  %p4264_p1 = scmp.lt.s32.totalorder %s4262_s27, %s4256_s25 }
 0x3bc   : > { %2250 = vperm.xlu0 %3897, %v2246_v58   ;;  %v4149_v58 = vld [vmem:[%s5809_s12 + $0x14] ss:$8 sps:$4 sm:$0xff]   ;;  %p4258_p12 = pnand %p4257_p11, %p4468_p5  ;;  %p4265_p2 = por %p4264_p1, %p4263_p0 }
 0x3be   : > { %2255 = vperm.xlu1 %3933, %v2247_v19   ;;  %v2245_v19 = vld [vmem:[%s5809_s12 + $0xc0] sm:$0x11]  ;;  %p4259_p13 = pneg %p4258_p12 }
 0x3c0   : > { %p4266_p3 = pnand %p4265_p2, %p4259_p13 }
 0x40e   : > { %v2128_v13 = vpop.permute.xlu0 %2127 }
 0x410   : > { %v2130_v44 = vpop.permute.xlu1 %2129 }
 0x411   : > { %v2131_v22 = vsel %vm729_vm2, %v2128_v13, %v2130_v44  ;;  %2135 = vst.msk [vmem:[#allocation2 + $0x68] sm:$0x3f] %vm2036_vm11, %v2130_v44  ;;  %vm2065_vm2 = vcmask 531460   ;;  %v4147_v13 = vld [vmem:[%s5809_s12 + $0x10] ss:$8 sps:$4 sm:$0xff]  }
 0x412   : > { %2134 = vst [vmem:[#allocation2 + $0x60] sm:$0x3f] %v2131_v22  ;;  %v2084_v12 = vpop.permute.xlu0 %2083  ;;  %v4152_v44 = vld [vmem:[%s5809_s12 + $0x4] ss:$8 sps:$4 sm:$0xff]   ;;  %v3665_v22 = vcombine.high %v2245_v19, %v2245_v19 }
 0x414   : > { %v2086_v54 = vpop.permute.xlu1 %2085 }
 0x415   : > { %v2088_v20 = vsel %vm2087_vm12, %v2084_v12, %v2086_v54  ;;  %2092 = vst.msk [vmem:[#allocation2 + $0x38] sm:$0x3f] %vm2036_vm11, %v2086_v54  ;;  %v2389_v12 = vsel %vm2387_vm10, 65535, %v4325_v17  ;;  %v4150_v54 = vld [vmem:[%s5809_s12] ss:$8 sps:$4 sm:$0xff]   ;;  %vm2383_vm11 = vcmask 531456  }
 0x416   : > { %2091 = vst [vmem:[#allocation2 + $0x30] sm:$0x3f] %v2088_v20  ;;  %v2094_v6 = vpop.permute.xlu0 %2093  ;;  %v3664_v20 = vcombine.low %v2245_v19, %v2245_v19  ;;  %vm2694_vm12 = vcmask 1041408  }
 0x418   : > { %v2096_v63 = vpop.permute.xlu1 %2095  ;;  %v2151_v55 = vld [vmem:[#allocation2 + $0x68] sm:$0x3f] }
 0x419   : > { %v2098_v51 = vsel %vm2097_vm15, %v2094_v6, %v2096_v63  ;;  %2102 = vst.msk [vmem:[#allocation2 + $0x38] sm:$0xc0] %vm2050_vm13, %v2096_v63  ;;  %v2159_v1 = vpack.c.bf16 %v2151_v55, %v2151_v55  ;;  %v2150_v5 = vld [vmem:[#allocation2 + $0x60] sm:$0x3f]  ;;  %v2394_v6 = vand.u32 %v3665_v22, %v2389_v12  ;;  %v4157_v55 = vld [vmem:[%s5809_s12 + $0xb4] ss:$8 sps:$4 sm:$0xff]  }
 0x41a   : > { %2104 = vst.msk [vmem:[#allocation2 + $0x48] sm:$0xf] %vm2053_vm14, %v2096_v63  ;;  %2101 = vst [vmem:[#allocation2 + $0x40] ss:$-12 sps:$4 sm:$0xcf] %v2098_v51   ;;  %v2106_v10 = vpop.permute.xlu0 %2105  ;;  %v2158_v2 = vpack.c.bf16 %v2150_v5, %v2150_v5  ;;  %v2391_v63 = vand.u32 %v3664_v20, %v2389_v12  ;;  %vm4343_vm15 = vmmov 0  }
 0x41b   : > { %3638 = vmatprep.subr.msk.bf16.mxu1 %vm2169_vm3, %v2159_v1  ;;  %v4155_v51 = vld [vmem:[%s5809_s12 + $0xb0] ss:$8 sps:$4 sm:$0xff]   ;;  %v4160_v1 = vld [vmem:[%s5809_s12 + $0xa4] ss:$8 sps:$4 sm:$0xff]   ;;  %v4158_v5 = vld [vmem:[%s5809_s12 + $0xa0] ss:$8 sps:$4 sm:$0xff]  }
 0x41c   : > { %v2108_v7 = vpop.permute.xlu1 %2107  ;;  %v2171_v31 = vsel %vm2169_vm3, %v2158_v2, 0  ;;  %v4163_v2 = vld [vmem:[%s5809_s12 + $0x94] ss:$8 sps:$4 sm:$0xff]   ;;  %v4183_v20 = vld [vmem:[%s5811_s14 + $0x30] ss:$20 sps:$4 sm:$0xff]   ;;  %vm3326_vm3 = vcmask 982016  }
 0x41d   : > { %v2110_v32 = vsel %vm2109_vm6, %v2106_v10, %v2108_v7  ;;  %2114 = vst.msk [vmem:[#allocation2 + $0x48] sm:$0xf0] %vm2065_vm2, %v2108_v7  ;;  %2185 = vmatpush1.bf16.msra.mxu1 %v2171_v31  ;;  %v4161_v10 = vld [vmem:[%s5809_s12 + $0x90] ss:$8 sps:$4 sm:$0xff]   ;;  %v4166_v31 = vld [vmem:[%s5809_s12 + $0x84] ss:$8 sps:$4 sm:$0xff]  }
 0x41e   : > { %2116 = vst.msk [vmem:[#allocation2 + $0x58] sm:$0x3] %vm2068_vm4, %v2108_v7  ;;  %2113 = vst [vmem:[#allocation2 + $0x50] ss:$-12 sps:$4 sm:$0xf3] %v2110_v32   ;;  %v2118_v3 = vpop.permute.xlu0 %2117 }
 0x41f   : > { %v4164_v7 = vld [vmem:[%s5809_s12 + $0x80] ss:$8 sps:$4 sm:$0xff]  }
 0x420   : > { %v2120_v29 = vpop.permute.xlu1 %2119  ;;  %v2145_v52 = vld [vmem:[#allocation2 + $0x38] sm:$0xff] }
 0x421   : > { %v2122_v4 = vsel %vm2121_vm8, %v2118_v3, %v2120_v29  ;;  %2126 = vst.msk [vmem:[#allocation2 + $0x58] sm:$0xfc] %vm2081_vm7, %v2120_v29  ;;  %v2144_v42 = vld [vmem:[#allocation2 + $0x30] sm:$0xff] }
 0x422   : > { %2125 = vst [vmem:[#allocation2 + $0x50] sm:$0xfc] %v2122_v4  ;;  %v2058_v11 = vpop.permute.xlu0 %2057 }
 0x424   : > { %v2060_v37 = vpop.permute.xlu1 %2059  ;;  %v2147_v23 = vld [vmem:[#allocation2 + $0x48] sm:$0xff] }
 0x425   : > { %v2061_v26 = vsel %vm669_vm1, %v2058_v11, %v2060_v37  ;;  %2066 = vst.msk [vmem:[#allocation2 + $0x18] sm:$0xf0] %vm2065_vm2, %v2060_v37  ;;  %v2146_v38 = vld [vmem:[#allocation2 + $0x40] sm:$0xff]  ;;  %vm2165_vm1 = vcmask 441344   ;;  %vm3445_vm2 = vcmask 73728  }
 0x426   : > { %2069 = vst.msk [vmem:[#allocation2 + $0x28] sm:$0x3] %vm2068_vm4, %v2060_v37  ;;  %2064 = vst [vmem:[#allocation2 + $0x20] ss:$-12 sps:$4 sm:$0xf3] %v2061_v26   ;;  %v2073_v60 = vpop.permute.xlu0 %2072 }
 0x428   : > { %v2075_v14 = vpop.permute.xlu1 %2074  ;;  %v2149_v30 = vld [vmem:[#allocation2 + $0x58] sm:$0xff] }
 0x429   : > { %v2077_v8 = vsel %vm2076_vm9, %v2073_v60, %v2075_v14  ;;  %2082 = vst.msk [vmem:[#allocation2 + $0x28] sm:$0xfc] %vm2081_vm7, %v2075_v14  ;;  %v2157_v18 = vpack.c.bf16 %v2149_v30, %v2147_v23  ;;  %v2148_v35 = vld [vmem:[#allocation2 + $0x50] sm:$0xff] }
 0x42a   : > { %2080 = vst [vmem:[#allocation2 + $0x20] sm:$0xfc] %v2077_v8  ;;  %v2156_v41 = vpack.c.bf16 %v2148_v35, %v2146_v38  ;;  %v2043_v43 = vpop.permute.xlu0 %2042 }
 0x42b   : > { %2186 = vmatprep.subr.bf16.mxu1 %v2157_v18 }
 0x42c   : > { %v2045_v40 = vpop.permute.xlu1 %2044  ;;  %2187 = vmatpush1.bf16.msra.mxu1 %v2156_v41 }
 0x42d   : > { %v2046_v56 = vsel %vm609_vm0, %v2043_v43, %v2045_v40  ;;  %2051 = vst.msk [vmem:[#allocation2 + $0x8] sm:$0xc0] %vm2050_vm13, %v2045_v40  ;;  %vm2561_vm13 = vcmask 105472  }
 0x42e   : > { %2054 = vst.msk [vmem:[#allocation2 + $0x18] sm:$0xf] %vm2053_vm14, %v2045_v40  ;;  %2049 = vst [vmem:[#allocation2 + $0x10] ss:$-12 sps:$4 sm:$0xcf] %v2046_v56   ;;  %vm2690_vm14 = vcmask 293888  }
 0x430   : > { %v2143_v9 = vld [vmem:[#allocation2 + $0x28] sm:$0xff] }
 0x431   : > { %v2155_v45 = vpack.c.bf16 %v2145_v52, %v2143_v9  ;;  %v2142_v27 = vld [vmem:[#allocation2 + $0x20] sm:$0xff]  ;;  %v4167_v9 = vld [vmem:[%s5810_s13 + $0x38] sm:$0xff]  }
 0x432   : > { %v2154_v16 = vpack.c.bf16 %v2144_v42, %v2142_v27  ;;  %2569 = vmatpush1.bf16.msra.mxu0 %v4167_v9  ;;  %v4168_v27 = vld [vmem:[%s5810_s13 + $0x30] sm:$0xff]  }
 0x433   : > { %2188 = vmatprep.subr.bf16.mxu1 %v2155_v45  ;;  %2570 = vmatprep.subr.bf16.mxu0 %v4325_v17 }
 0x434   : > { %2189 = vmatpush1.bf16.msra.mxu1 %v2154_v16  ;;  %v2139_v15 = vld [vmem:[#allocation2 + $0x8] sm:$0xff] }
 0x435   : > { %v2141_v21 = vld [vmem:[#allocation2 + $0x18] sm:$0xff]  ;;  %v2138_v25 = vld [vmem:[#allocation2] sm:$0xff]  ;;  %v2140_v49 = vld [vmem:[#allocation2 + $0x10] sm:$0xff] }
 0x436   : > { %v2153_v47 = vpack.c.bf16 %v2141_v21, %v2139_v15  ;;  %v2152_v50 = vpack.c.bf16 %v2140_v49, %v2138_v25  ;;  %2571 = vmatpush1.bf16.msra.mxu0 %v4168_v27  ;;  %v4169_v16 = vld [vmem:[%s5810_s13 + $0x28] sm:$0xff]   ;;  %v4170_v15 = vld [vmem:[%s5810_s13 + $0x20] sm:$0xff]   ;;  %v4171_v21 = vld [vmem:[%s5810_s13 + $0x18] sm:$0xff]  }
 0x437   : > { %v2251_v26 = vpop.permute.xlu0 %2250  ;;  %2572 = vmatprep.subr.bf16.mxu0 %v4325_v17  ;;  %v4173_v25 = vld [vmem:[%s5810_s13 + $0x8] sm:$0xff]  }
 0x438   : > { %2190 = vmatprep.subr.bf16.mxu1 %v2153_v47  ;;  %v4172_v47 = vld [vmem:[%s5810_s13 + $0x10] sm:$0xff]  }
 0x439   : > { %2191 = vmatpush1.bf16.msra.mxu1 %v2152_v50  ;;  %v2256_v8 = vpop.permute.xlu1 %2255 }
 0x43a   : > { %2396 = vmatprep.subr.bf16.mxu1 %v4131_v46  ;;  %2573 = vmatpush1.bf16.msra.mxu0 %v4169_v16  ;;  %v4174_v46 = vld [vmem:[%s5810_s13] sm:$0xff]   ;;  %v4193_v16 = vld [vmem:[%s5811_s14 + $0x38] ss:$20 sps:$4 sm:$0xff]  }
 0x43b   : > { %2574 = vmatprep.subr.bf16.mxu0 %v4325_v17 }
 0x43c   : > { %3639 = vmatmul.mubr.msk.bf16.vlgmr.msra.gmra.mxu1 %vm2165_vm1, %v4128_v36 }
 0x43d   : > { %2397 = vmatpush1.bf16.msra.mxu1 %v4129_v24  ;;  %v4175_v24 = vld [vmem:[%s5810_s13 + $0x40] sm:$0x7f]  }
 0x43e   : > { %2398 = vmatprep.subr.bf16.mxu1 %v4134_v28  ;;  %2575 = vmatpush1.bf16.msra.mxu0 %v4170_v15  ;;  %v2942_v15 = vld [vmem:[%s5802_s5 + $0x120] sm:$0xff] }
 0x43f   : > { %2576 = vmatprep.subr.bf16.mxu0 %v4325_v17 }
 0x441   : > { %2399 = vmatpush1.bf16.msra.mxu1 %v4132_v53 }
 0x442   : > { %2400 = vmatprep.subr.bf16.mxu1 %v4137_v48  ;;  %2577 = vmatpush1.bf16.msra.mxu0 %v4171_v21  ;;  %v4194_v21 = vld [vmem:[%s5811_s14 + $0x10] ss:$20 sps:$4 sm:$0xff]  }
 0x443   : > { %2578 = vmatprep.subr.bf16.mxu0 %v4325_v17 }
 0x445   : > { %2401 = vmatpush1.bf16.msra.mxu1 %v4135_v34 }
 0x446   : > { %2402 = vmatprep.subr.bf16.mxu1 %v4140_v59  ;;  %2579 = vmatpush1.bf16.msra.mxu0 %v4172_v47  ;;  %v2566_v59 = vand.u32 %v4175_v24, %v5305_v62  ;;  %v3735_v47 = vcombine.high %v2942_v15, %v2942_v15  ;;  %v4213_v24 = vld [vmem:[%s5802_s5 + $0xa4] ss:$20 sps:$4 sm:$0xff]  }
 0x447   : > { %2580 = vmatprep.subr.bf16.mxu0 %v4325_v17 }
 0x449   : > { %2403 = vmatpush1.bf16.msra.mxu1 %v4138_v61 }
 0x44a   : > { %2404 = vmatprep.subr.bf16.mxu1 %v4143_v0  ;;  %2581 = vmatpush1.bf16.msra.mxu0 %v4173_v25  ;;  %v4199_v25 = vld [vmem:[%s5802_s5 + $0xf0] ss:$20 sps:$4 sm:$0xff]  }
 0x44b   : > { %2582 = vmatprep.subr.bf16.mxu0 %v4325_v17 }
 0x44d   : > { %2405 = vmatpush1.bf16.msra.mxu1 %v4141_v33 }
 0x44e   : > { %2406 = vmatprep.subr.bf16.mxu1 %v4146_v39  ;;  %2583 = vmatpush1.bf16.msra.mxu0 %v4174_v46  ;;  %v2622_v39 = vld [vmem:[%s5811_s14 + $0x50] sm:$0x33]  ;;  %v3734_v46 = vcombine.low %v2942_v15, %v2942_v15 }
 0x44f   : > { %2598 = vmatprep.subr.bf16.mxu0 %v4325_v17  ;;  %v3688_v19 = vcombine.high %v2622_v39, %v2622_v39 }
 0x451   : > { %2407 = vmatpush1.bf16.msra.mxu1 %v4144_v57 }
 0x452   : > { %2408 = vmatprep.subr.bf16.mxu1 %v4149_v58  ;;  %2599 = vmatpush2.bf16.msra.mxu0 %v2566_v59  ;;  %v4208_v59 = vld [vmem:[%s5802_s5 + $0xd0] ss:$20 sps:$4 sm:$0xff]  }
 0x453   : > { %3692 = vmatprep.subr.msk.bf16.mxu0 %vm2694_vm12, %v3688_v19  ;;  %v4225_v19 = vld [vmem:[%s5802_s5 + $0x54] ss:$20 sps:$4 sm:$0xff]  }
 0x455   : > { %2409 = vmatpush1.bf16.msra.mxu1 %v4147_v13  ;;  %v2623_v13 = vld [vmem:[%s5811_s14 + $0x58] sm:$0x33] }
 0x456   : > { %2410 = vmatprep.subr.bf16.mxu1 %v4152_v44  ;;  %v3690_v62 = vcombine.high %v2623_v13, %v2623_v13  ;;  %v3689_v22 = vcombine.low %v2623_v13, %v2623_v13  ;;  %v4226_v13 = vld [vmem:[%s5802_s5 + $0x58] ss:$20 sps:$4 sm:$0xff]  }
 0x459   : > { %2411 = vmatpush1.bf16.msra.mxu1 %v4150_v54  ;;  %v2702_v54 = vsel %vm2694_vm12, %v3689_v22, 0  ;;  %v4229_v22 = vld [vmem:[%s5802_s5 + $0x28] ss:$20 sps:$4 sm:$0xff]  }
 0x45a   : > { %2418 = vmatprep.subr.bf16.mxu1 %v2394_v6  ;;  %v4185_v6 = vld [vmem:[%s5811_s14 + $0x34] ss:$20 sps:$4 sm:$0xff]  }
 0x45d   : > { %2419 = vmatpush2.bf16.msra.mxu1 %v2391_v63 }
 0x45e   : > { %2420 = vmatprep.subr.bf16.mxu1 %v4157_v55 }
 0x461   : > { %2421 = vmatpush2.bf16.msra.mxu1 %v4155_v51 }
 0x462   : > { %2422 = vmatprep.subr.bf16.mxu1 %v4160_v1 }
 0x465   : > { %2423 = vmatpush2.bf16.msra.mxu1 %v4158_v5 }
 0x466   : > { %2424 = vmatprep.subr.bf16.mxu1 %v4163_v2 }
 0x469   : > { %2425 = vmatpush2.bf16.msra.mxu1 %v4161_v10 }
 0x46a   : > { %2426 = vmatprep.subr.bf16.mxu1 %v4166_v31 }
 0x46d   : > { %2427 = vmatpush2.bf16.msra.mxu1 %v4164_v7  ;;  %v3687_v7 = vcombine.low %v2622_v39, %v2622_v39  ;;  %v4222_v39 = vld [vmem:[%s5802_s5 + $0x84] ss:$20 sps:$4 sm:$0xff]  }
 0x46e   : > { %3694 = vmatprep.subr.msk.bf16.mxu1 %vm2694_vm12, %v3690_v62  ;;  %v4231_v62 = vld [vmem:[%s5802_s5 + $0x2c] ss:$20 sps:$4 sm:$0xff]  }
 0x4fc   : > { %v2210_v32 = vpop.f32.mrf.mxu1 }
 0x4fe   : > { %v2212_v3 = vpop.f32.mrf.mxu1 }
 0x500   : > { %v2214_v29 = vpop.f32.mrf.mxu1 }
 0x501   : > { %v2219_v37 = vpack.c.bf16 %v2214_v29, %v2210_v32 }
 0x502   : > { %v2216_v4 = vpop.f32.mrf.mxu1 }
 0x503   : > { %v2220_v11 = vpack.c.bf16 %v2216_v4, %v2212_v3 }
 0x505   : > { %3666 = vmatprep.mubr.msk.bf16.mxu1 %vm2383_vm11, %v2220_v11 }
 0x506   : > { %2429 = vmatmul.mubr.bf16.vlgmr.msra.gmra.mxu1 %v2219_v37 }
 0x507   : > { %2785 = vmatprep.mubr.bf16.mxu1 %v4325_v17  ;;  %2764 = vmatpush1.bf16.msra.mxu1 %v2702_v54  ;;  %v4232_v54 = vld [vmem:[%s5802_s5 + $0x30] ss:$20 sps:$4 sm:$0xff]  }
 0x508   : > { %2765 = vmatprep.subr.bf16.mxu1 %v4185_v6  ;;  %v4235_v6 = vld [vmem:[%s5802_s5] ss:$20 sps:$4 sm:$0xff]  }
 0x50b   : > { %2766 = vmatpush1.bf16.msra.mxu1 %v4183_v20  ;;  %v4237_v20 = vld [vmem:[%s5802_s5 + $0x4] ss:$20 sps:$4 sm:$0xff]  }
 0x5c6   : > { %v2430_v60 = vpop.f32.mrf.mxu1 }
 0x5c7   : > { %v2431_v14 = vadd.f32 %v2430_v60, %v2251_v26  ;;  %v4182_v60 = vld [vmem:[%s5811_s14 + $0x2c] ss:$20 sps:$4 sm:$0xff]  }
 0x5c8   : > { %v2432_v23 = vpop.f32.mrf.mxu1 }
 0x5c9   : > { %v2433_v30 = vadd.f32 %v2432_v23, %v2251_v26  ;;  %v2439_v38 = vmax.f32 %v2431_v14, 0.0  ;;  %v2696_v26 = vsel %vm2694_vm12, %v3687_v7, 0  ;;  %v4180_v14 = vld [vmem:[%s5811_s14 + $0x28] ss:$20 sps:$4 sm:$0xff]   ;;  %v4186_v23 = vld [vmem:[%s5811_s14] ss:$20 sps:$4 sm:$0xff]  }
 0x5ca   : > { %v2434_v18 = vpop.f32.mrf.mxu1 }
 0x5cb   : > { %v2440_v35 = vmax.f32 %v2433_v30, 0.0  ;;  %v2435_v41 = vadd.f32 %v2434_v18, %v2256_v8  ;;  %v4188_v30 = vld [vmem:[%s5811_s14 + $0x4] ss:$20 sps:$4 sm:$0xff]   ;;  %v4191_v18 = vld [vmem:[%s5811_s14 + $0xc] ss:$20 sps:$4 sm:$0xff]  }
 0x5cc   : > { %v2436_v43 = vpop.f32.mrf.mxu1  ;;  %2767 = vmatprep.subr.bf16.mxu1 %v4191_v18 }
 0x5cd   : > { %v3934_v40 = vpack.i.bf16 %v2440_v35, %v2439_v38  ;;  %v2437_v56 = vadd.f32 %v2436_v43, %v2256_v8  ;;  %v2441_v52 = vmax.f32 %v2435_v41, 0.0  ;;  %v4189_v8 = vld [vmem:[%s5811_s14 + $0x8] ss:$20 sps:$4 sm:$0xff]   ;;  %v4192_v43 = vld [vmem:[%s5811_s14 + $0x60] ss:$0 sps:$4 sm:$0x33]  }
 0x5ce   : > { %2768 = vmatpush1.bf16.msra.mxu1 %v4189_v8 }
 0x5cf   : > { %v2442_v45 = vmax.f32 %v2437_v56, 0.0  ;;  %3935 = vrot.lane.b32.xlu0 %v3934_v40, %s5847_s29 }
 0x5d1   : > { %v3939_v42 = vpack.i.bf16 %v2442_v45, %v2441_v52 }
 0x5d3   : > { %3940 = vrot.lane.b32.xlu1 %v3939_v42, %s5847_s29  ;;  %v4201_v42 = vld [vmem:[%s5802_s5 + $0xf4] ss:$20 sps:$4 sm:$0xff]  }
 0x641   : > { %v3936_v49 = vpop.permute.xlu0 %3935 }
 0x642   : > { %v3938_v50 = vunpack.i.h.bf16 %v3936_v49  ;;  %v3937_v36 = vunpack.i.l.bf16 %v3936_v49  ;;  %v4207_v49 = vld [vmem:[%s5802_s5 + $0xcc] ss:$20 sps:$4 sm:$0xff]  }
 0x644   : > { %v2462_v28 = vmax.f32 %v2440_v35, %v3938_v50  ;;  %v2455_v53 = vsel %vm609_vm0, %v3937_v36, %v3938_v50  ;;  %v4204_v50 = vld [vmem:[%s5802_s5 + $0xfc] ss:$20 sps:$4 sm:$0xff]  }
 0x645   : > { %v2461_v48 = vmax.f32 %v2439_v38, %v2455_v53  ;;  %v3941_v34 = vpop.permute.xlu1 %3940  ;;  %v2941_v38 = vld [vmem:[%s5802_s5 + $0x118] sm:$0xff]  ;;  %v4210_v53 = vld [vmem:[%s5802_s5 + $0xd4] ss:$20 sps:$4 sm:$0xff]  }
 0x646   : > { %v3943_v61 = vunpack.i.h.bf16 %v3941_v34  ;;  %v3942_v0 = vunpack.i.l.bf16 %v3941_v34  ;;  %v3733_v35 = vcombine.high %v2941_v38, %v2941_v38  ;;  %v4205_v36 = vld [vmem:[%s5802_s5 + $0xc8] ss:$20 sps:$4 sm:$0xff]  }
 0x647   : > { %v3944_v33 = vpack.i.bf16 %v2462_v28, %v2461_v48  ;;  %v4219_v34 = vld [vmem:[%s5802_s5 + $0x7c] ss:$20 sps:$4 sm:$0xff]  }
 0x648   : > { %v2464_v57 = vmax.f32 %v2442_v45, %v3943_v61  ;;  %v2456_v58 = vsel %vm609_vm0, %v3942_v0, %v3943_v61  ;;  %vm2477_vm0 = vcmask 941056   ;;  %3164 = vmatprep.subr.bf16.mxu1 %v3733_v35  ;;  %v3732_v45 = vcombine.low %v2941_v38, %v2941_v38  ;;  %v4216_v61 = vld [vmem:[%s5802_s5 + $0xac] ss:$20 sps:$4 sm:$0xff]  }
 0x649   : > { %v2463_v44 = vmax.f32 %v2441_v52, %v2456_v58  ;;  %3945 = vrot.lane.b32.xlu0 %v3944_v33, %s4341_s28  ;;  %v2708_v52 = vsel %vm2694_vm12, %v4192_v43, 0  ;;  %v4217_v0 = vld [vmem:[%s5802_s5 + $0x78] ss:$20 sps:$4 sm:$0xff]   ;;  %v4214_v33 = vld [vmem:[%s5802_s5 + $0xa8] ss:$20 sps:$4 sm:$0xff]  }
 0x64a   : > { %v4223_v58 = vld [vmem:[%s5802_s5 + $0x50] ss:$20 sps:$4 sm:$0xff]  }
 0x64b   : > { %v3949_v12 = vpack.i.bf16 %v2464_v57, %v2463_v44 }
 0x64d   : > { %3950 = vrot.lane.b32.xlu1 %v3949_v12, %s4341_s28  ;;  %v4234_v12 = vld [vmem:[%s5802_s5 + $0x34] ss:$20 sps:$4 sm:$0xff]  }
 0x6bb   : > { %v3946_v63 = vpop.permute.xlu0 %3945 }
 0x6bc   : > { %v3948_v55 = vunpack.i.h.bf16 %v3946_v63  ;;  %v3947_v51 = vunpack.i.l.bf16 %v3946_v63  ;;  %v4240_v63 = vld [vmem:[%s5802_s5 + $0xc] ss:$20 sps:$4 sm:$0xff]  }
 0x6be   : > { %v2478_v5 = vsel %vm2477_vm0, %v3947_v51, %v3948_v55  ;;  %v2485_v31 = vmax.f32 %v2462_v28, %v3948_v55  ;;  %v4202_v28 = vld [vmem:[%s5802_s5 + $0xf8] ss:$20 sps:$4 sm:$0xff]   ;;  %v4238_v55 = vld [vmem:[%s5802_s5 + $0x8] ss:$20 sps:$4 sm:$0xff]  }
 0x6bf   : > { %v3951_v1 = vpop.permute.xlu1 %3950  ;;  %v2484_v29 = vmax.f32 %v2461_v48, %v2478_v5  ;;  %v4211_v48 = vld [vmem:[%s5802_s5 + $0xa0] ss:$20 sps:$4 sm:$0xff]  }
 0x6c0   : > { %v3953_v10 = vunpack.i.h.bf16 %v3951_v1  ;;  %v3952_v2 = vunpack.i.l.bf16 %v3951_v1  ;;  %v2837_v5 = vld [vmem:[%s5812_s15] sm:$0xff] }
 0x6c2   : > { %v2487_v32 = vmax.f32 %v2464_v57, %v3953_v10  ;;  %v2479_v3 = vsel %vm2477_vm0, %v3952_v2, %v3953_v10  ;;  %v4220_v57 = vld [vmem:[%s5802_s5 + $0x80] ss:$20 sps:$4 sm:$0xff]  }
 0x6c3   : > { %v2486_v4 = vmax.f32 %v2463_v44, %v2479_v3  ;;  %v4228_v44 = vld [vmem:[%s5802_s5 + $0x5c] ss:$20 sps:$4 sm:$0xff]   ;;  %v2838_v3 = vld [vmem:[%s5812_s15 + $0x8] sm:$0xff] }
 0x6c4   : > { %v2489_v11 = vpack.c.bf16 %v2487_v32, %v2485_v31  ;;  %v2839_v10 = vld [vmem:[%s5812_s15 + $0x10] sm:$0xff]  ;;  %v2842_v31 = vld [vmem:[%s5812_s15 + $0x28] sm:$0xff]  ;;  %v2844_v32 = vld [vmem:[%s5812_s15 + $0x38] sm:$0xff] }
 0x6c5   : > { %v2488_v37 = vpack.c.bf16 %v2486_v4, %v2484_v29  ;;  %v2840_v29 = vld [vmem:[%s5812_s15 + $0x18] sm:$0xff] }
 0x6c6   : > { %3676 = vmatprep.mubr.msk.bf16.mxu0 %vm2561_vm13, %v2489_v11 }
 0x6c7   : > { %2601 = vmatmul.mubr.bf16.vlgmr.msra.gmra.mxu0 %v2488_v37  ;;  %v2843_v37 = vld [vmem:[%s5812_s15 + $0x30] sm:$0xff] }
 0x6c8   : > { %2721 = vmatpush1.bf16.msra.mxu0 %v2696_v26  ;;  %2742 = vmatprep.mubr.bf16.mxu0 %v4325_v17  ;;  %v4342_v17 = vmov 0.0   ;;  %v2845_v26 = vld [vmem:[%s5812_s15 + $0x40] sm:$0xff] }
 0x6c9   : > { %2722 = vmatprep.subr.bf16.mxu0 %v4182_v60 }
 0x6cc   : > { %2723 = vmatpush1.bf16.msra.mxu0 %v4180_v14 }
 0x6cd   : > { %2724 = vmatprep.subr.bf16.mxu0 %v4188_v30 }
 0x6d0   : > { %2725 = vmatpush1.bf16.msra.mxu0 %v4186_v23 }
 0x6d1   : > { %3772 = vmatprep.subr.bf16.mxu0 %v4342_v17 }
 0x787   : > { %v2602_v41 = vpop.f32.mrf.mxu0 }
 0x789   : > { %v2604_v40 = vpop.f32.mrf.mxu0 }
 0x78b   : > { %v2605_v56 = vpop.f32.mrf.mxu0 }
 0x78c   : > { %v2609_v9 = vpack.c.bf16 %v2605_v56, %v2602_v41 }
 0x78d   : > { %v2607_v27 = vpop.f32.mrf.mxu0 }
 0x78e   : > { %3693 = vmatmul.mubr.msk.bf16.vlgmr.msra.gmra.mxu0 %vm2690_vm14, %v2609_v9  ;;  %3695 = vmatmul.mubr.msk.bf16.vlgmr.msra.gmra.mxu1 %vm2690_vm14, %v2609_v9 }
 0x78f   : > { %3773 = vmatpush3.bf16.msra.mxu0 %v2708_v52  ;;  %3778 = vmatprep.mubr.msk.bf16.mxu0 %vm4343_vm15, %v4342_v17 }
 0x790   : > { %3774 = vmatprep.subr.bf16.mxu0 %v4342_v17  ;;  %3165 = vmatpush1.bf16.xpose.msra.mxu1 %v3732_v45 }
 0x791   : > { %3166 = vmatprep.subr.bf16.mxu1 %v4201_v42 }
 0x793   : > { %3775 = vmatpush3.bf16.msra.mxu0 %v4193_v16 }
 0x794   : > { %3776 = vmatprep.subr.bf16.mxu0 %v4342_v17 }
 0x797   : > { %3777 = vmatpush3.bf16.msra.mxu0 %v4194_v21 }
 0x798   : > { %3204 = vmatprep.subr.bf16.mxu0 %v3735_v47  ;;  %3167 = vmatpush1.bf16.xpose.msra.mxu1 %v4199_v25 }
 0x799   : > { %3168 = vmatprep.subr.bf16.mxu1 %v4207_v49 }
 0x79a   : > { %3779 = vmatmul.mubr.msk.bf16.vlgmr.msra.gmra.mxu0 %vm2690_vm14, %v2609_v9 }
 0x79b   : > { %3205 = vmatpush1.bf16.xpose.msra.mxu0 %v3734_v46 }
 0x79c   : > { %3206 = vmatprep.subr.bf16.mxu0 %v4204_v50 }
 0x7a0   : > { %3169 = vmatpush1.bf16.xpose.msra.mxu1 %v4205_v36 }
 0x7a1   : > { %3170 = vmatprep.subr.bf16.mxu1 %v4213_v24 }
 0x7a3   : > { %3207 = vmatpush1.bf16.xpose.msra.mxu0 %v4202_v28 }
 0x7a4   : > { %3208 = vmatprep.subr.bf16.mxu0 %v4210_v53 }
 0x7a8   : > { %3171 = vmatpush1.bf16.xpose.msra.mxu1 %v4211_v48 }
 0x7a9   : > { %3172 = vmatprep.subr.bf16.mxu1 %v4219_v34 }
 0x7ab   : > { %3209 = vmatpush1.bf16.xpose.msra.mxu0 %v4208_v59 }
 0x7ac   : > { %3210 = vmatprep.subr.bf16.mxu0 %v4216_v61 }
 0x7b0   : > { %3173 = vmatpush1.bf16.xpose.msra.mxu1 %v4217_v0 }
 0x7b1   : > { %3174 = vmatprep.subr.bf16.mxu1 %v4225_v19 }
 0x7b3   : > { %3211 = vmatpush1.bf16.xpose.msra.mxu0 %v4214_v33 }
 0x7b4   : > { %3212 = vmatprep.subr.bf16.mxu0 %v4222_v39 }
 0x7b8   : > { %3175 = vmatpush1.bf16.xpose.msra.mxu1 %v4223_v58 }
 0x7b9   : > { %3176 = vmatprep.subr.bf16.mxu1 %v4231_v62 }
 0x7bb   : > { %3213 = vmatpush1.bf16.xpose.msra.mxu0 %v4220_v57 }
 0x7bc   : > { %3214 = vmatprep.subr.bf16.mxu0 %v4228_v44 }
 0x7c0   : > { %3177 = vmatpush1.bf16.xpose.msra.mxu1 %v4229_v22 }
 0x7c1   : > { %3178 = vmatprep.subr.bf16.mxu1 %v4237_v20 }
 0x7c3   : > { %3215 = vmatpush1.bf16.xpose.msra.mxu0 %v4226_v13  ;;  %v4241_v13 = vld [vmem:[%s5802_s5 + $0x128] ss:$0 sps:$4 sm:$0xff]  }
 0x7c4   : > { %3216 = vmatprep.subr.bf16.mxu0 %v4234_v12 }
 0x7c8   : > { %3179 = vmatpush1.bf16.xpose.msra.mxu1 %v4235_v6  ;;  %v3162_v6 = vsel %vm909_vm5, %v4241_v13, 0 }
 0x7c9   : > { %3782 = vmatprep.subr.bf16.mxu1 %v4342_v17 }
 0x7cb   : > { %3217 = vmatpush1.bf16.xpose.msra.mxu0 %v4232_v54 }
 0x7cc   : > { %3218 = vmatprep.subr.bf16.mxu0 %v4240_v63 }
 0x7d3   : > { %3219 = vmatpush1.bf16.xpose.msra.mxu0 %v4238_v55  ;;  %v4242_v55 = vld [vmem:[%s5802_s5 + $0x100] ss:$20 sps:$4 sm:$0xff]  }
 0x7d4   : > { %3802 = vmatprep.subr.bf16.mxu0 %v4342_v17 }
 0x84e   : > { %v2744_v51 = vpop.f32.mrf.mxu0  ;;  %v2787_v1 = vpop.f32.mrf.mxu1 }
 0x84f   : > { %v2847_v60 = vmul.f32 %v2837_v5, %v2744_v51  ;;  %v2849_v14 = vmul.f32 %v2839_v10, %v2787_v1  ;;  %v3159_v51 = vsel %vm909_vm5, %v4242_v55, 0  ;;  %v4243_v1 = vld [vmem:[%s5802_s5 + $0xd8] ss:$20 sps:$4 sm:$0xff]   ;;  %v4244_v10 = vld [vmem:[%s5802_s5 + $0xb0] ss:$20 sps:$4 sm:$0xff]  }
 0x850   : > { %v2746_v2 = vpop.f32.mrf.mxu0  ;;  %v2789_v7 = vpop.f32.mrf.mxu1  ;;  %v3156_v5 = vsel %vm909_vm5, %v4243_v1, 0 }
 0x851   : > { %v2848_v8 = vmul.f32 %v2838_v3, %v2746_v2  ;;  %v2850_v18 = vmul.f32 %v2840_v29, %v2789_v7  ;;  %v3153_v2 = vsel %vm909_vm5, %v4244_v10, 0  ;;  %v2846_v7 = vld [vmem:[%s5812_s15 + $0x48] sm:$0xff] }
 0x852   : > { %v2748_v4 = vpop.f32.mrf.mxu0  ;;  %v2791_v11 = vpop.f32.mrf.mxu1 }
 0x853   : > { %v2852_v23 = vmul.f32 %v2842_v31, %v2748_v4  ;;  %v2854_v30 = vmul.f32 %v2844_v32, %v2791_v11  ;;  %v2841_v31 = vld [vmem:[%s5812_s15 + $0x20] sm:$0xff]  ;;  %v4245_v32 = vld [vmem:[%s5802_s5 + $0x88] ss:$20 sps:$4 sm:$0xff]  }
 0x854   : > { %v2750_v38 = vpop.f32.mrf.mxu0  ;;  %v2793_v35 = vpop.f32.mrf.mxu1  ;;  %v3150_v4 = vsel %vm909_vm5, %v4245_v32, 0 }
 0x855   : > { %v2857_v41 = vadd.f32 %v2852_v23, %v2847_v60  ;;  %v2871_v43 = vadd.f32 %v2854_v30, %v2849_v14  ;;  %v2853_v40 = vmul.f32 %v2843_v37, %v2750_v38  ;;  %v2855_v56 = vmul.f32 %v2845_v26, %v2793_v35  ;;  %v4246_v60 = vld [vmem:[%s5802_s5 + $0x60] ss:$20 sps:$4 sm:$0xff]  }
 0x856   : > { %v3147_v23 = vsel %vm909_vm5, %v4246_v60, 0 }
 0x857   : > { %v2858_v9 = vrot.slane %v2857_v41, 4  ;;  %v2872_v52 = vrot.slane %v2871_v43, 4  ;;  %v2864_v45 = vadd.f32 %v2853_v40, %v2848_v8  ;;  %v2878_v27 = vadd.f32 %v2855_v56, %v2850_v18  ;;  %v4247_v8 = vld [vmem:[%s5802_s5 + $0x38] ss:$20 sps:$4 sm:$0xff]  }
 0x858   : > { %v3144_v38 = vsel %vm909_vm5, %v4247_v8, 0 }
 0x859   : > { %v2859_v42 = vadd.f32 %v2858_v9, %v2857_v41  ;;  %v2873_v16 = vadd.f32 %v2872_v52, %v2871_v43  ;;  %v2865_v15 = vrot.slane %v2864_v45, 4  ;;  %v2879_v21 = vrot.slane %v2878_v27, 4  ;;  %v4248_v41 = vld [vmem:[%s5802_s5 + $0x10] ss:$20 sps:$4 sm:$0xff]  }
 0x85a   : > { %v2830_v47 = vpop.f32.mrf.mxu0  ;;  %v3141_v40 = vsel %vm909_vm5, %v4248_v41, 0  ;;  %v4249_v52 = vld [vmem:[%s5804_s7 + $0x28] ss:$0 sps:$4 sm:$0x33]  }
 0x85b   : > { %v2860_v25 = vrot.slane %v2859_v42, 2  ;;  %v2874_v49 = vrot.slane %v2873_v16, 2  ;;  %v2866_v46 = vadd.f32 %v2865_v15, %v2864_v45  ;;  %v2880_v50 = vadd.f32 %v2879_v21, %v2878_v27  ;;  %v4250_v27 = vld [vmem:[%s5804_s7 + $0x20] sm:$0xff]   ;;  %v4252_v21 = vld [vmem:[%s5804_s7 + $0x10] sm:$0xff]  }
 0x85c   : > { %v3780_v36 = vpop.f32.mrf.mxu0  ;;  %v2851_v29 = vmul.f32 %v2841_v31, %v2830_v47  ;;  %v3346_v45 = vsel %vm3326_vm3, %v4249_v52, 0  ;;  %v3337_v47 = vsel %vm3326_vm3, %v4252_v21, 0 }
 0x85d   : > { %v2861_v24 = vadd.f32 %v2860_v25, %v2859_v42  ;;  %v2875_v28 = vadd.f32 %v2874_v49, %v2873_v16  ;;  %v2867_v53 = vrot.slane %v2866_v46, 2  ;;  %v2881_v48 = vrot.slane %v2880_v50, 2  ;;  %v4251_v16 = vld [vmem:[%s5804_s7 + $0x18] sm:$0xff]   ;;  %v4253_v25 = vld [vmem:[%s5804_s7 + $0x8] sm:$0xff]  }
 0x85e   : > { %v2833_v34 = vpop.f32.mrf.mxu0  ;;  %v2885_v37 = vsel %vm909_vm5, %v2851_v29, 0.0  ;;  %v3343_v42 = vsel %vm3326_vm3, %v4250_v27, 0  ;;  %v3340_v15 = vsel %vm3326_vm3, %v4251_v16, 0  ;;  %v3334_v49 = vsel %vm3326_vm3, %v4253_v25, 0 }
 0x85f   : > { %v2862_v59 = vrot.slane %v2861_v24, 1  ;;  %v2876_v61 = vrot.slane %v2875_v28, 1  ;;  %v2868_v0 = vadd.f32 %v2867_v53, %v2866_v46  ;;  %v2882_v39 = vadd.f32 %v2881_v48, %v2880_v50  ;;  %v4254_v46 = vld [vmem:[%s5804_s7] sm:$0xff]  }
 0x860   : > { %v3781_v33 = vpop.f32.mrf.mxu0  ;;  %v2856_v3 = vmul.f32 %v2846_v7, %v2833_v34  ;;  %v3331_v50 = vsel %vm3326_vm3, %v4254_v46, 0 }
 0x861   : > { %v2869_v57 = vrot.slane %v2868_v0, 1  ;;  %v2883_v58 = vrot.slane %v2882_v39, 1  ;;  %v2863_v19 = vadd.f32 %v2862_v59, %v2861_v24  ;;  %v2877_v62 = vadd.f32 %v2876_v61, %v2875_v28 }
 0x862   : > { %v2886_v11 = vsel %vm909_vm5, %v2856_v3, 0.0 }
 0x863   : > { %v2870_v44 = vadd.f32 %v2869_v57, %v2868_v0  ;;  %v2884_v22 = vadd.f32 %v2883_v58, %v2882_v39  ;;  %v2894_v20 = vpack.c.bf16 %v2863_v19, %v2863_v19  ;;  %v2896_v63 = vpack.c.bf16 %v2877_v62, %v2877_v62  ;;  %v2944_v0 = vld [vmem:[%s5803_s6] sm:$0x1] }
 0x864   : > { %v2887_v26 = vadd.f32 %v2886_v11, %v2885_v37  ;;  %v4255_v19 = vld [vmem:[%s5806_s9] sm:$0x1f]  }
 0x865   : > { %v2895_v12 = vpack.c.bf16 %v2870_v44, %v2870_v44  ;;  %v2897_v54 = vpack.c.bf16 %v2884_v22, %v2884_v22 }
 0x866   : > { %v2888_v14 = vrot.slane %v2887_v26, 4 }
 0x867   : > { %3196 = vmatprep.mubr.bf16.mxu1 %v2895_v12  ;;  %3236 = vmatprep.mubr.bf16.mxu0 %v2897_v54 }
 0x868   : > { %3197 = vmatmul.mubr.bf16.vlgmr.msra.gmra.mxu1 %v2894_v20  ;;  %3237 = vmatmul.mubr.bf16.vlgmr.msra.gmra.mxu0 %v2896_v63  ;;  %v2889_v30 = vadd.f32 %v2888_v14, %v2887_v26  ;;  %v3297_v20 = vld [vmem:[%s5805_s8] sm:$0x1] }
 0x869   : > { %3783 = vmatpush3.bf16.xpose.msra.mxu1 %v3162_v6  ;;  %3798 = vmatprep.mubr.msk.bf16.mxu1 %vm4343_vm15, %v4342_v17 }
 0x86a   : > { %3784 = vmatprep.subr.bf16.mxu1 %v4342_v17  ;;  %3814 = vmatprep.mubr.msk.bf16.mxu0 %vm4343_vm15, %v4342_v17  ;;  %v2890_v18 = vrot.slane %v2889_v30, 2 }
 0x86b   : > { %3803 = vmatpush3.bf16.xpose.msra.mxu0 %v3346_v45 }
 0x86c   : > { %v2891_v35 = vadd.f32 %v2890_v18, %v2889_v30  ;;  %3804 = vmatprep.subr.bf16.mxu0 %v4342_v17 }
 0x86e   : > { %v2892_v43 = vrot.slane %v2891_v35, 1 }
 0x870   : > { %v2893_v56 = vadd.f32 %v2892_v43, %v2891_v35 }
 0x871   : > { %3785 = vmatpush3.bf16.xpose.msra.mxu1 %v3159_v51 }
 0x872   : > { %3786 = vmatprep.subr.bf16.mxu1 %v4342_v17  ;;  %v2898_v9 = vpack.c.bf16 %v2893_v56, %v2893_v56 }
 0x873   : > { %3805 = vmatpush3.bf16.xpose.msra.mxu0 %v3343_v42 }
 0x874   : > { %3806 = vmatprep.subr.bf16.mxu0 %v4342_v17 }
 0x879   : > { %3787 = vmatpush3.bf16.xpose.msra.mxu1 %v3156_v5 }
 0x87a   : > { %3788 = vmatprep.subr.bf16.mxu1 %v4342_v17 }
 0x87b   : > { %3807 = vmatpush3.bf16.xpose.msra.mxu0 %v3340_v15 }
 0x87c   : > { %3808 = vmatprep.subr.bf16.mxu0 %v4342_v17 }
 0x881   : > { %3789 = vmatpush3.bf16.xpose.msra.mxu1 %v3153_v2  ;;  %v3392_v2 = vld [vmem:[%s5807_s10] sm:$0x1] }
 0x882   : > { %3790 = vmatprep.subr.bf16.mxu1 %v4342_v17 }
 0x883   : > { %3809 = vmatpush3.bf16.xpose.msra.mxu0 %v3337_v47 }
 0x884   : > { %3810 = vmatprep.subr.bf16.mxu0 %v4342_v17 }
 0x889   : > { %3791 = vmatpush3.bf16.xpose.msra.mxu1 %v3150_v4 }
 0x88a   : > { %3792 = vmatprep.subr.bf16.mxu1 %v4342_v17 }
 0x88b   : > { %3811 = vmatpush3.bf16.xpose.msra.mxu0 %v3334_v49 }
 0x88c   : > { %3812 = vmatprep.subr.bf16.mxu0 %v4342_v17 }
 0x891   : > { %3793 = vmatpush3.bf16.xpose.msra.mxu1 %v3147_v23 }
 0x892   : > { %3794 = vmatprep.subr.bf16.mxu1 %v4342_v17 }
 0x893   : > { %3813 = vmatpush3.bf16.xpose.msra.mxu0 %v3331_v50 }
 0x894   : > { %3818 = vmatprep.subr.bf16.mxu0 %v4342_v17 }
 0x899   : > { %3795 = vmatpush3.bf16.xpose.msra.mxu1 %v3144_v38 }
 0x89a   : > { %3796 = vmatprep.subr.bf16.mxu1 %v4342_v17 }
 0x8a1   : > { %3797 = vmatpush3.bf16.xpose.msra.mxu1 %v3141_v40 }
 0x8a8   : > { %3799 = vmatmul.mubr.msk.bf16.vlgmr.msra.gmra.mxu1 %vm909_vm5, %v2898_v9  ;;  %vm3398_vm5 = vcmask 687104  }
 0x8a9   : > { %v3403_v12 = vsel %vm3398_vm5, %v4255_v19, 0 }
 0x928   : > { %v3198_v36 = vpop.f32.mrf.mxu1  ;;  %v3238_v24 = vpop.f32.mrf.mxu0 }
 0x929   : > { %v3199_v33 = vadd.f32 %v3198_v36, %v2944_v0 }
 0x92a   : > { %v3200_v28 = vpop.f32.mrf.mxu1  ;;  %v3240_v53 = vpop.f32.mrf.mxu0 }
 0x92b   : > { %v3239_v39 = vadd.f32 %v3238_v24, %v3199_v33 }
 0x92c   : > { %v3201_v48 = vpop.f32.mrf.mxu1  ;;  %v3241_v34 = vpop.f32.mrf.mxu0 }
 0x92e   : > { %v3202_v59 = vpop.f32.mrf.mxu1  ;;  %v3242_v61 = vpop.f32.mrf.mxu0 }
 0x968   : > { %v3278_v57 = vpop.f32.mrf.mxu1 }
 0x969   : > { %v3279_v58 = vadd.f32 %v3278_v57, %v3239_v39 }
 0x96a   : > { %v3800_v13 = vpop.f32.mrf.mxu1 }
 0x96b   : > { %v3284_v44 = vmax.f32 %v3279_v58, 0.0 }
 0x96c   : > { %v3281_v62 = vpop.f32.mrf.mxu1 }
 0x96d   : > { %v3285_v22 = vpack.c.bf16 %v3284_v44, %v3284_v44 }
 0x96e   : > { %v3801_v54 = vpop.f32.mrf.mxu1 }
 0x96f   : > { %3815 = vmatmul.mubr.msk.bf16.vlgmr.msra.gmra.mxu0 %vm3326_vm3, %v3285_v22 }
 0x970   : > { %3819 = vmatpush3.bf16.xpose.msra.mxu0 %v3403_v12  ;;  %3820 = vmatprep.mubr.msk.bf16.mxu0 %vm4343_vm15, %v4342_v17 }
 0xa2f   : > { %v3382_v6 = vpop.f32.mrf.mxu0 }
 0xa30   : > { %v3383_v63 = vadd.f32 %v3382_v6, %v3297_v20 }
 0xa31   : > { %v3816_v55 = vpop.f32.mrf.mxu0 }
 0xa32   : > { %v3388_v51 = vmax.f32 %v3383_v63, 0.0 }
 0xa33   : > { %v3385_v1 = vpop.f32.mrf.mxu0 }
 0xa34   : > { %v3389_v5 = vpack.c.bf16 %v3388_v51, %v3388_v51 }
 0xa35   : > { %v3817_v10 = vpop.f32.mrf.mxu0 }
 0xa36   : > { %3821 = vmatmul.mubr.msk.bf16.vlgmr.msra.gmra.mxu0 %vm3398_vm5, %v3389_v5 }
 0xaf6   : > { %v3439_v17 = vpop.f32.mrf.mxu0 }
 0xaf7   : > { %v3440_v7 = vadd.f32 %v3439_v17, %v3392_v2 }
 0xaf8   : > { %v3822_v31 = vpop.f32.mrf.mxu0 }
 0xaf9   : > { %3446 = vst.msk [vmem:[%s511_s17] sm:$0x1] %vm3445_vm2, %v3440_v7 }
 0xafa   : > { %v3442_v32 = vpop.f32.mrf.mxu0 }
 0xafb   : > { %4269 = shalt.err (!%p4266_p3)
}
 0xafc   : > { %s4270_s26 = scalar_lea.hbm %s5756_s19, 16  ;;  %s4274_s21 = scalar_lea.hbm %s5813_s16, 32 }
 0xafd   : > { %p4271_p4 = scmp.ne.s32.totalorder %s5756_s19, %s4270_s26  ;;  %p4275_p9 = scmp.lt.s32.totalorder %s5756_s19, %s5813_s16 }
 0xafe   : > { %p4276_p10 = scmp.lt.s32.totalorder %s4274_s21, %s4270_s26 }
 0xaff   : > { %p4272_p7 = pnand %p4271_p4, %p4468_p5 }
 0xb00   : > { %p4277_p11 = por %p4276_p10, %p4275_p9 }
 0xb01   : > { %p4273_p8 = pneg %p4272_p7 }
 0xb03   : > { %p4278_p12 = pnand %p4277_p11, %p4273_p8 }
 0xb05   : > { %4281 = shalt.err (!%p4278_p12)
}
 0xb06   : > { %3824 = dma.vmem_to_hbm [thread:$0]  (%p4468_p5), %s5758_s18, 16, %s5756_s19, %s3448_s23   ;;  %v3823_v3 = vpop.f32.mrf.mxu0 }
 0xb07 PF: > { %s5853_s29 = sld [smem:[#allocation8_spill]] }
 0xb08   : > { %s5854_s25 = sld [smem:[#allocation6_spill]] }
 0xb0d   : > { %p3830_p13 = scmp.ge.s32.totalorder %s5853_s29, 2 }
 0xb0e   : > { %s3472_s24 = sand.u32 1, %s5854_s25  }
 0xb0f   : > { %p3827_p0 = pnand %p3830_p13, %p4472_p6  ;;  %s3473_s27 = scalar_lea.sflag [#allocation4], %s3472_s24 }
 0xb11   : > { %p3828_p1 = pneg %p3827_p0 }
 0xb13   : > { %4299 = dma.done.wait (%p3828_p1), %s3473_s27, 16  }
 0xb14   : > { %4301 = vsyncadd (%p3828_p1), %s3473_s27, 4294967280  ;;  %s5856_s24 = sld [smem:[#allocation9_spill]]  ;;  %s5859_s21 = smov %s4308_s22 }
 0xb15   : > { %s5857_s26 = sld [smem:[#allocation7_spill]] }
 0xb16   : > { %s5858_s23 = sld [smem:[#allocation10_spill]] }
 0xb1a   : > { %p26_p2 = scmp.ge.s32.totalorder %s5856_s24, 4  }
 0xb1b   : > { %s5860_s22 = smov %s5857_s26 }
 0xb1c   :  { %28 = sbr.rel (!%p26_p2) target bundleno = 6 (0x6), region = 119 }
 0xb21   :  { %3477 = vsyncpa [#allocation4], 1 }
 0xb22   :  { %3479 = vsyncpa [#allocation4 + $0x1], 1 }

</bundles_post_ra>
